<compile_context>
chip_gen: v7x
topology: tpu7x:2x2x1
jax: 0.10.0
libtpu: 0.0.40
codegen_flags: <defaults>
</compile_context>

<pallas_src>
import jax
import jax.numpy as jnp
from jax.experimental import pallas as pl
from jax.experimental.pallas import tpu as pltpu


# ----------------------------------------------------------------------------
# Fused Pallas kernel
#
# pt_ref: (S, 32, 32) im2col "slabs", S = 2 branches * N * 2 half-planes.
#   dim1 = k = c_in*9 + kh*3 + kw  (27 real taps, zero padded to 32)
#   dim2 = j = ohl*8 + ow          (the 32 columns of PyTorch's view(-1, 32))
# Each slab matmul  Wp(32c,32k) @ pt[s](32k,32j)  yields a (c_out, j) block.
# Concatenating the blocks along rows reproduces exactly the rows of
# `relu(conv1(x)).view(-1, 32)` in (branch, n, half, c) order.  The FC stack
# is row-independent, so it runs once over both branches; only the final
# z1*z2 pairing (branch = outermost row index) depends on row order.
# ----------------------------------------------------------------------------
def fused_siamese_kernel(pt_ref, wp_ref, bc_ref,
                         w1_ref, b1_ref, w2_ref, b2_ref, w3_ref, b3_ref,
                         out_ref):
    num_slabs = pt_ref.shape[0]          # 4 * N      (static)
    rows_per_branch = out_ref.shape[0]   # 64 * N     (static)

    wp = wp_ref[...]                     # (32, 32)  [c_out, k] (k zero-padded)
    bc = bc_ref[...]                     # (32, 1)   conv bias per c_out

    # conv1 + bias + relu: one small MXU matmul per (branch, n, half) slab.
    blocks = []
    for s in range(num_slabs):
        blk = jnp.dot(wp, pt_ref[s], preferred_element_type=jnp.float32)
        blocks.append(jnp.maximum(blk + bc, 0.0))            # (32 c, 32 j)
    h = jnp.concatenate(blocks, axis=0)                       # (128N, 32)

    # fc1 + relu, fc2 + relu — shared weights, both branches batched in rows.
    a1 = jnp.dot(h, w1_ref[...], preferred_element_type=jnp.float32)
    a1 = jnp.maximum(a1 + b1_ref[...], 0.0)                   # (128N, 256)
    a2 = jnp.dot(a1, w2_ref[...], preferred_element_type=jnp.float32)
    a2 = jnp.maximum(a2 + b2_ref[...], 0.0)                   # (128N, 64)

    # fc3 as an elementwise multiply + lane reduction (avoids a degenerate
    # (.,64)x(64,1) MXU pass), then pair the branches and apply the sigmoid.
    z = jnp.sum(a2 * w3_ref[...], axis=-1, keepdims=True) + b3_ref[...]
    z1 = z[:rows_per_branch, :]          # branch of input1
    z2 = z[rows_per_branch:, :]          # branch of input2
    prod = z1 * z2                       # "euclidean_distance" in the ref
    out_ref[...] = pl.reciprocal(1.0 + jnp.exp(-prod), approx=False)  # sigmoid


# ----------------------------------------------------------------------------
# pallas_call wrapper + thin XLA glue (im2col slabs, final row permutation)
# ----------------------------------------------------------------------------
def _full_spec(shape):
    ndim = len(shape)
    return pl.BlockSpec(shape, lambda: (0,) * ndim)


def _im2col_slabs(x_pair):
    # x_pair: (2, N, 3, H, W) NCHW for both branches; valid 3x3 conv.
    # Returns (2*N*G, 32, 32) with k = c_in*9+kh*3+kw (padded 27->32),
    # j = ohl*8+ow, slab index = (branch, n, group-of-4-output-rows).
    b2, n, c, hgt, wid = x_pair.shape
    oh, ow = hgt - 2, wid - 2
    # The view(-1, 32) regrouping below assumes OW == 8 and OH % 4 == 0
    # (true for the module's 10x10 inputs).
    assert ow == 8 and oh % 4 == 0, "demo supports conv outputs with OW=8, OH%4==0"
    groups = oh // 4
    cols = [x_pair[:, :, :, kh:kh + oh, kw:kw + ow]
            for kh in range(3) for kw in range(3)]            # 9 x (2,N,3,OH,OW)
    p = jnp.stack(cols, axis=3)                               # (2,N,3,9,OH,OW)
    p = p.reshape(b2, n, 27, oh, ow)                          # k = c*9+kh*3+kw
    p = p.reshape(b2, n, 27, groups, 4, ow)                   # oh -> (g, ohl)
    p = jnp.transpose(p, (0, 1, 3, 2, 4, 5))                  # (2,N,G,27,4,OW)
    p = p.reshape(b2 * n * groups, 27, 32)                    # (S, k, j)
    return jnp.pad(p, ((0, 0), (0, 5), (0, 0)))               # pad k 27 -> 32


def siamese_forward(input1, input2, params):
    wc, bc, w1, b1, w2, b2, w3, b3 = params                   # PyTorch layouts
    n = input1.shape[0]
    x_pair = jnp.stack([input1, input2], axis=0)              # (2, N, 3, H, W)
    pt = _im2col_slabs(x_pair)                                # (S, 32, 32)
    s_total = pt.shape[0]
    rows_per_branch = (s_total // 2) * 32                     # 64 * N
    wp = jnp.pad(wc.reshape(32, 27), ((0, 0), (0, 5)))        # (32, 32)

    operands = (pt, wp, bc.reshape(32, 1),
                w1.T, b1.reshape(1, -1),
                w2.T, b2.reshape(1, -1),
                w3.reshape(1, -1), b3.reshape(1, 1))

    out = pl.pallas_call(
        fused_siamese_kernel,
        out_shape=jax.ShapeDtypeStruct((rows_per_branch, 1), jnp.float32),
        in_specs=[_full_spec(op.shape) for op in operands],
        out_specs=_full_spec((rows_per_branch, 1)),
        compiler_params=pltpu.CompilerParams(
            allow_input_fusion=[True] * len(operands)),
    )(*operands)

    # Kernel rows are ordered (n, group, c); PyTorch's view(-1, 32) rows are
    # ordered (n, c, group).  Permute the tiny (64N,) result accordingly.
    groups = rows_per_branch // (n * 32)
    o = out.reshape(n, groups, 32)
    return jnp.transpose(o, (0, 2, 1)).reshape(rows_per_branch, 1)


# ----------------------------------------------------------------------------
# Pure-JAX reference (mirrors the PyTorch module) and deterministic params
# ----------------------------------------------------------------------------
def reference_forward(input1, input2, params):
    wc, bc, w1, b1, w2, b2, w3, b3 = params
    hp = jax.lax.Precision.HIGHEST

    def subnet(x):
        y = jax.lax.conv_general_dilated(
            x, wc, window_strides=(1, 1), padding="VALID",
            dimension_numbers=("NCHW", "OIHW", "NCHW"), precision=hp)
        y = jnp.maximum(y + bc.reshape(1, -1, 1, 1), 0.0)
        y = y.reshape(-1, 32)
        y = jnp.maximum(jnp.dot(y, w1.T, precision=hp) + b1, 0.0)
        y = jnp.maximum(jnp.dot(y, w2.T, precision=hp) + b2, 0.0)
        return jnp.dot(y, w3.T, precision=hp) + b3

    prod = subnet(input1) * subnet(input2)
    return 1.0 / (1.0 + jnp.exp(-prod))


def init_params(key):
    # Shapes exactly as the nn.Module's parameters (PyTorch layouts).
    ks = jax.random.split(key, 8)
    wc = 0.1 * jax.random.normal(ks[0], (32, 3, 3, 3), jnp.float32)   # conv1.weight
    bc = 0.1 * jax.random.normal(ks[1], (32,), jnp.float32)           # conv1.bias
    w1 = 0.1 * jax.random.normal(ks[2], (256, 32), jnp.float32)       # fc1.weight
    b1 = 0.1 * jax.random.normal(ks[3], (256,), jnp.float32)          # fc1.bias
    w2 = 0.1 * jax.random.normal(ks[4], (64, 256), jnp.float32)       # fc2.weight
    b2 = 0.1 * jax.random.normal(ks[5], (64,), jnp.float32)           # fc2.bias
    w3 = 0.1 * jax.random.normal(ks[6], (1, 64), jnp.float32)         # fc3.weight
    b3 = 0.1 * jax.random.normal(ks[7], (1,), jnp.float32)            # fc3.bias
    return (wc, bc, w1, b1, w2, b2, w3, b3)


if __name__ == "__main__":
    key = jax.random.PRNGKey(0)
    k_in1, k_in2, k_params = jax.random.split(key, 3)

    # NCHW inputs: batch=2, channels=3 (fixed by conv1), spatial=10x10
    input1 = jax.random.normal(k_in1, (2, 3, 10, 10), jnp.float32)
    input2 = jax.random.normal(k_in2, (2, 3, 10, 10), jnp.float32)
    params = init_params(k_params)

    out = jax.block_until_ready(jax.jit(siamese_forward)(input1, input2, params))
    ref = jax.block_until_ready(jax.jit(reference_forward)(input1, input2, params))

    # Expected shape: (N * OH * OW, 1) = (2 * 8 * 8, 1) = (128, 1)
    assert out.shape == (128, 1), out.shape
    assert bool(jnp.all(jnp.isfinite(out)))
    assert bool(jnp.all((out > 0.0) & (out < 1.0))), "sigmoid range violated"
    assert bool(jnp.allclose(out, ref, rtol=2e-3, atol=2e-3)), \
        float(jnp.max(jnp.abs(out - ref)))
    print("KERNEL_OK")
</pallas_src>

<mosaic_0001>
module attributes {stable_mosaic.version = 11 : i64} {
  func.func @fused_siamese_kernel(%arg0: memref<8x32x32xf32, #tpu.memory_space<vmem>>, %arg1: memref<32x32xf32, #tpu.memory_space<vmem>>, %arg2: memref<32x1xf32, #tpu.memory_space<vmem>>, %arg3: memref<32x256xf32, #tpu.memory_space<vmem>>, %arg4: memref<1x256xf32, #tpu.memory_space<vmem>>, %arg5: memref<256x64xf32, #tpu.memory_space<vmem>>, %arg6: memref<1x64xf32, #tpu.memory_space<vmem>>, %arg7: memref<1x64xf32, #tpu.memory_space<vmem>>, %arg8: memref<1x1xf32, #tpu.memory_space<vmem>>, %arg9: memref<128x1xf32, #tpu.memory_space<vmem>>) attributes {dimension_semantics = [], scalar_prefetch = 0 : i64, scratch_operands = 0 : i64, tpu.core_type = #tpu.core_type<tc>} {
    %c0 = arith.constant 0 : index
    %c0_0 = arith.constant 0 : index
    %0 = vector.load %arg1[%c0, %c0_0] : memref<32x32xf32, #tpu.memory_space<vmem>>, vector<32x32xf32>
    %c0_1 = arith.constant 0 : index
    %c0_2 = arith.constant 0 : index
    %1 = vector.load %arg2[%c0_1, %c0_2] : memref<32x1xf32, #tpu.memory_space<vmem>>, vector<32x1xf32>
    %c0_3 = arith.constant 0 : index
    %c0_4 = arith.constant 0 : index
    %c0_5 = arith.constant 0 : index
    %2 = vector.load %arg0[%c0_3, %c0_4, %c0_5] : memref<8x32x32xf32, #tpu.memory_space<vmem>>, vector<1x32x32xf32>
    %3 = vector.shape_cast %2 : vector<1x32x32xf32> to vector<32x32xf32>
    %cst = arith.constant dense<0.000000e+00> : vector<32x32xf32>
    %4 = tpu.matmul %0, %3, %cst {dimension_numbers = #tpu.dot_dimension_numbers<[1], [0], [0], [1], [0, 0, 1, 1], [], []>} : vector<32x32xf32>, vector<32x32xf32>, vector<32x32xf32> -> vector<32x32xf32>
    %5 = vector.broadcast %1 : vector<32x1xf32> to vector<32x32xf32>
    %6 = arith.addf %4, %5 : vector<32x32xf32>
    %cst_6 = arith.constant 0.000000e+00 : f32
    %7 = vector.broadcast %cst_6 : f32 to vector<32x32xf32>
    %8 = arith.maximumf %6, %7 : vector<32x32xf32>
    %c1 = arith.constant 1 : index
    %c0_7 = arith.constant 0 : index
    %c0_8 = arith.constant 0 : index
    %9 = vector.load %arg0[%c1, %c0_7, %c0_8] : memref<8x32x32xf32, #tpu.memory_space<vmem>>, vector<1x32x32xf32>
    %10 = vector.shape_cast %9 : vector<1x32x32xf32> to vector<32x32xf32>
    %cst_9 = arith.constant dense<0.000000e+00> : vector<32x32xf32>
    %11 = tpu.matmul %0, %10, %cst_9 {dimension_numbers = #tpu.dot_dimension_numbers<[1], [0], [0], [1], [0, 0, 1, 1], [], []>} : vector<32x32xf32>, vector<32x32xf32>, vector<32x32xf32> -> vector<32x32xf32>
    %12 = vector.broadcast %1 : vector<32x1xf32> to vector<32x32xf32>
    %13 = arith.addf %11, %12 : vector<32x32xf32>
    %cst_10 = arith.constant 0.000000e+00 : f32
    %14 = vector.broadcast %cst_10 : f32 to vector<32x32xf32>
    %15 = arith.maximumf %13, %14 : vector<32x32xf32>
    %c2 = arith.constant 2 : index
    %c0_11 = arith.constant 0 : index
    %c0_12 = arith.constant 0 : index
    %16 = vector.load %arg0[%c2, %c0_11, %c0_12] : memref<8x32x32xf32, #tpu.memory_space<vmem>>, vector<1x32x32xf32>
    %17 = vector.shape_cast %16 : vector<1x32x32xf32> to vector<32x32xf32>
    %cst_13 = arith.constant dense<0.000000e+00> : vector<32x32xf32>
    %18 = tpu.matmul %0, %17, %cst_13 {dimension_numbers = #tpu.dot_dimension_numbers<[1], [0], [0], [1], [0, 0, 1, 1], [], []>} : vector<32x32xf32>, vector<32x32xf32>, vector<32x32xf32> -> vector<32x32xf32>
    %19 = vector.broadcast %1 : vector<32x1xf32> to vector<32x32xf32>
    %20 = arith.addf %18, %19 : vector<32x32xf32>
    %cst_14 = arith.constant 0.000000e+00 : f32
    %21 = vector.broadcast %cst_14 : f32 to vector<32x32xf32>
    %22 = arith.maximumf %20, %21 : vector<32x32xf32>
    %c3 = arith.constant 3 : index
    %c0_15 = arith.constant 0 : index
    %c0_16 = arith.constant 0 : index
    %23 = vector.load %arg0[%c3, %c0_15, %c0_16] : memref<8x32x32xf32, #tpu.memory_space<vmem>>, vector<1x32x32xf32>
    %24 = vector.shape_cast %23 : vector<1x32x32xf32> to vector<32x32xf32>
    %cst_17 = arith.constant dense<0.000000e+00> : vector<32x32xf32>
    %25 = tpu.matmul %0, %24, %cst_17 {dimension_numbers = #tpu.dot_dimension_numbers<[1], [0], [0], [1], [0, 0, 1, 1], [], []>} : vector<32x32xf32>, vector<32x32xf32>, vector<32x32xf32> -> vector<32x32xf32>
    %26 = vector.broadcast %1 : vector<32x1xf32> to vector<32x32xf32>
    %27 = arith.addf %25, %26 : vector<32x32xf32>
    %cst_18 = arith.constant 0.000000e+00 : f32
    %28 = vector.broadcast %cst_18 : f32 to vector<32x32xf32>
    %29 = arith.maximumf %27, %28 : vector<32x32xf32>
    %c4 = arith.constant 4 : index
    %c0_19 = arith.constant 0 : index
    %c0_20 = arith.constant 0 : index
    %30 = vector.load %arg0[%c4, %c0_19, %c0_20] : memref<8x32x32xf32, #tpu.memory_space<vmem>>, vector<1x32x32xf32>
    %31 = vector.shape_cast %30 : vector<1x32x32xf32> to vector<32x32xf32>
    %cst_21 = arith.constant dense<0.000000e+00> : vector<32x32xf32>
    %32 = tpu.matmul %0, %31, %cst_21 {dimension_numbers = #tpu.dot_dimension_numbers<[1], [0], [0], [1], [0, 0, 1, 1], [], []>} : vector<32x32xf32>, vector<32x32xf32>, vector<32x32xf32> -> vector<32x32xf32>
    %33 = vector.broadcast %1 : vector<32x1xf32> to vector<32x32xf32>
    %34 = arith.addf %32, %33 : vector<32x32xf32>
    %cst_22 = arith.constant 0.000000e+00 : f32
    %35 = vector.broadcast %cst_22 : f32 to vector<32x32xf32>
    %36 = arith.maximumf %34, %35 : vector<32x32xf32>
    %c5 = arith.constant 5 : index
    %c0_23 = arith.constant 0 : index
    %c0_24 = arith.constant 0 : index
    %37 = vector.load %arg0[%c5, %c0_23, %c0_24] : memref<8x32x32xf32, #tpu.memory_space<vmem>>, vector<1x32x32xf32>
    %38 = vector.shape_cast %37 : vector<1x32x32xf32> to vector<32x32xf32>
    %cst_25 = arith.constant dense<0.000000e+00> : vector<32x32xf32>
    %39 = tpu.matmul %0, %38, %cst_25 {dimension_numbers = #tpu.dot_dimension_numbers<[1], [0], [0], [1], [0, 0, 1, 1], [], []>} : vector<32x32xf32>, vector<32x32xf32>, vector<32x32xf32> -> vector<32x32xf32>
    %40 = vector.broadcast %1 : vector<32x1xf32> to vector<32x32xf32>
    %41 = arith.addf %39, %40 : vector<32x32xf32>
    %cst_26 = arith.constant 0.000000e+00 : f32
    %42 = vector.broadcast %cst_26 : f32 to vector<32x32xf32>
    %43 = arith.maximumf %41, %42 : vector<32x32xf32>
    %c6 = arith.constant 6 : index
    %c0_27 = arith.constant 0 : index
    %c0_28 = arith.constant 0 : index
    %44 = vector.load %arg0[%c6, %c0_27, %c0_28] : memref<8x32x32xf32, #tpu.memory_space<vmem>>, vector<1x32x32xf32>
    %45 = vector.shape_cast %44 : vector<1x32x32xf32> to vector<32x32xf32>
    %cst_29 = arith.constant dense<0.000000e+00> : vector<32x32xf32>
    %46 = tpu.matmul %0, %45, %cst_29 {dimension_numbers = #tpu.dot_dimension_numbers<[1], [0], [0], [1], [0, 0, 1, 1], [], []>} : vector<32x32xf32>, vector<32x32xf32>, vector<32x32xf32> -> vector<32x32xf32>
    %47 = vector.broadcast %1 : vector<32x1xf32> to vector<32x32xf32>
    %48 = arith.addf %46, %47 : vector<32x32xf32>
    %cst_30 = arith.constant 0.000000e+00 : f32
    %49 = vector.broadcast %cst_30 : f32 to vector<32x32xf32>
    %50 = arith.maximumf %48, %49 : vector<32x32xf32>
    %c7 = arith.constant 7 : index
    %c0_31 = arith.constant 0 : index
    %c0_32 = arith.constant 0 : index
    %51 = vector.load %arg0[%c7, %c0_31, %c0_32] : memref<8x32x32xf32, #tpu.memory_space<vmem>>, vector<1x32x32xf32>
    %52 = vector.shape_cast %51 : vector<1x32x32xf32> to vector<32x32xf32>
    %cst_33 = arith.constant dense<0.000000e+00> : vector<32x32xf32>
    %53 = tpu.matmul %0, %52, %cst_33 {dimension_numbers = #tpu.dot_dimension_numbers<[1], [0], [0], [1], [0, 0, 1, 1], [], []>} : vector<32x32xf32>, vector<32x32xf32>, vector<32x32xf32> -> vector<32x32xf32>
    %54 = vector.broadcast %1 : vector<32x1xf32> to vector<32x32xf32>
    %55 = arith.addf %53, %54 : vector<32x32xf32>
    %cst_34 = arith.constant 0.000000e+00 : f32
    %56 = vector.broadcast %cst_34 : f32 to vector<32x32xf32>
    %57 = arith.maximumf %55, %56 : vector<32x32xf32>
    %58 = tpu.concatenate %8, %15, %22, %29, %36, %43, %50, %57 in 0 : vector<32x32xf32>, vector<32x32xf32>, vector<32x32xf32>, vector<32x32xf32>, vector<32x32xf32>, vector<32x32xf32>, vector<32x32xf32>, vector<32x32xf32> -> vector<256x32xf32>
    %c0_35 = arith.constant 0 : index
    %c0_36 = arith.constant 0 : index
    %59 = vector.load %arg3[%c0_35, %c0_36] : memref<32x256xf32, #tpu.memory_space<vmem>>, vector<32x256xf32>
    %cst_37 = arith.constant dense<0.000000e+00> : vector<256x256xf32>
    %60 = tpu.matmul %58, %59, %cst_37 {dimension_numbers = #tpu.dot_dimension_numbers<[1], [0], [0], [1], [0, 0, 1, 1], [], []>} : vector<256x32xf32>, vector<32x256xf32>, vector<256x256xf32> -> vector<256x256xf32>
    %c0_38 = arith.constant 0 : index
    %c0_39 = arith.constant 0 : index
    %61 = vector.load %arg4[%c0_38, %c0_39] : memref<1x256xf32, #tpu.memory_space<vmem>>, vector<1x256xf32>
    %62 = vector.broadcast %61 : vector<1x256xf32> to vector<256x256xf32>
    %63 = arith.addf %60, %62 : vector<256x256xf32>
    %cst_40 = arith.constant 0.000000e+00 : f32
    %64 = vector.broadcast %cst_40 : f32 to vector<256x256xf32>
    %65 = arith.maximumf %63, %64 : vector<256x256xf32>
    %c0_41 = arith.constant 0 : index
    %c0_42 = arith.constant 0 : index
    %66 = vector.load %arg5[%c0_41, %c0_42] : memref<256x64xf32, #tpu.memory_space<vmem>>, vector<256x64xf32>
    %cst_43 = arith.constant dense<0.000000e+00> : vector<256x64xf32>
    %67 = tpu.matmul %65, %66, %cst_43 {dimension_numbers = #tpu.dot_dimension_numbers<[1], [0], [0], [1], [0, 0, 1, 1], [], []>} : vector<256x256xf32>, vector<256x64xf32>, vector<256x64xf32> -> vector<256x64xf32>
    %c0_44 = arith.constant 0 : index
    %c0_45 = arith.constant 0 : index
    %68 = vector.load %arg6[%c0_44, %c0_45] : memref<1x64xf32, #tpu.memory_space<vmem>>, vector<1x64xf32>
    %69 = vector.broadcast %68 : vector<1x64xf32> to vector<256x64xf32>
    %70 = arith.addf %67, %69 : vector<256x64xf32>
    %cst_46 = arith.constant 0.000000e+00 : f32
    %71 = vector.broadcast %cst_46 : f32 to vector<256x64xf32>
    %72 = arith.maximumf %70, %71 : vector<256x64xf32>
    %c0_47 = arith.constant 0 : index
    %c0_48 = arith.constant 0 : index
    %73 = vector.load %arg7[%c0_47, %c0_48] : memref<1x64xf32, #tpu.memory_space<vmem>>, vector<1x64xf32>
    %74 = vector.broadcast %73 : vector<1x64xf32> to vector<256x64xf32>
    %75 = arith.mulf %72, %74 : vector<256x64xf32>
    %cst_49 = arith.constant dense<0.000000e+00> : vector<256xf32>
    %76 = vector.multi_reduction <add>, %75, %cst_49 [1] : vector<256x64xf32> to vector<256xf32>
    %77 = vector.shape_cast %76 : vector<256xf32> to vector<256x1xf32>
    %c0_50 = arith.constant 0 : index
    %c0_51 = arith.constant 0 : index
    %78 = vector.load %arg8[%c0_50, %c0_51] : memref<1x1xf32, #tpu.memory_space<vmem>>, vector<1x1xf32>
    %79 = vector.broadcast %78 : vector<1x1xf32> to vector<256x1xf32>
    %80 = arith.addf %77, %79 : vector<256x1xf32>
    %81 = vector.extract_strided_slice %80 {offsets = [0, 0], sizes = [128, 1], strides = [1, 1]} : vector<256x1xf32> to vector<128x1xf32>
    %82 = vector.extract_strided_slice %80 {offsets = [128, 0], sizes = [128, 1], strides = [1, 1]} : vector<256x1xf32> to vector<128x1xf32>
    %83 = arith.mulf %81, %82 : vector<128x1xf32>
    %cst_52 = arith.constant 0.000000e+00 : f32
    %84 = vector.broadcast %cst_52 : f32 to vector<128x1xf32>
    %85 = arith.subf %84, %83 : vector<128x1xf32>
    %86 = math.exp %85 : vector<128x1xf32>
    %cst_53 = arith.constant 1.000000e+00 : f32
    %87 = vector.broadcast %cst_53 : f32 to vector<128x1xf32>
    %88 = arith.addf %87, %86 : vector<128x1xf32>
    %89 = tpu.reciprocal %88 : vector<128x1xf32> -> vector<128x1xf32>
    %c0_54 = arith.constant 0 : index
    %c0_55 = arith.constant 0 : index
    %90 = vector.load %arg9[%c0_54, %c0_55] : memref<128x1xf32, #tpu.memory_space<vmem>>, vector<128x1xf32>
    tpu.vector_store %arg9[%c0_54, %c0_55], %89 {strides = array<i32>} : memref<128x1xf32, #tpu.memory_space<vmem>>, vector<128x1xf32>,
    return
  }
}

</mosaic_0001>

<bundles_post_ra>
// kernel: siamese_forward.2
= control target key start
LH: loop header
LB: loop body
LE: loop exit
PB: predicated region body
PF: predicated region fallthrough
CT: control target
= control target key end

     0   :  { %s4146_s0 = inlined_call_operand.vmem [shape: f32[32,1], index: 0, kind: input, shape index: {}]   ;;  %s4147_s1 = inlined_call_operand.vmem [shape: f32[1,256], index: 1, kind: input, shape index: {}]   ;;  %s4148_s2 = inlined_call_operand.vmem [shape: f32[1,64], index: 2, kind: input, shape index: {}]   ;;  %s4149_s3 = inlined_call_operand.<no memory space> [shape: f32[1,1], index: 3, kind: input, shape index: {}]   ;;  %s4150_s4 = inlined_call_operand.vmem [shape: f32[64,256], index: 4, kind: input, shape index: {}]   ;;  %s4151_s5 = inlined_call_operand.vmem [shape: f32[8,27,32], index: 5, kind: input, shape index: {}]   ;;  %s4152_s6 = inlined_call_operand.<no memory space> [shape: f32[], index: 6, kind: input, shape index: {}]   ;;  %s4153_s7 = inlined_call_operand.vmem [shape: f32[256,32], index: 7, kind: input, shape index: {}]   ;;  %s4154_s8 = inlined_call_operand.vmem [shape: f32[32,27], index: 8, kind: input, shape index: {}]   ;;  %s4155_s9 = inlined_call_operand.vmem [shape: f32[64], index: 9, kind: input, shape index: {}]   ;;  %s4156_s10 = inlined_call_operand.vmem [shape: f32[128,1], index: 10, kind: output, shape index: {}]  }
   0x1   :  { %v3166_v0 = vstv %s4152_s6  ;;  %v17_v1 = vstv %s4149_s3 }
   0x2   :  { %18 = vst [vmem:[#allocation12] sm:$0x1] %v17_v1 }
   0x3   :  { %v43_v2 = vlaneseq  ;;  %v37_v3 = vld [vmem:[%s4151_s5] sm:$0xff]  ;;  %v3105_v4 = vmov 0   ;;  %v2569_v6 = vld [vmem:[%s4151_s5 + $0x8] sm:$0xff]  ;;  %v2570_v10 = vld [vmem:[%s4151_s5 + $0x10] sm:$0xff]  ;;  %vm784_vm2 = vcmask 261120   ;;  %vm2316_vm4 = vcmask 523264  }
   0x4   :  { %3039 = vset.pattern.permute.xlu0 %v3105_v4  ;;  %3040 = vset.pattern.permute.xlu1 %v3105_v4  ;;  %v2572_v7 = vld [vmem:[%s4151_s5 + $0x20] sm:$0xff]  ;;  %v2573_v8 = vld [vmem:[%s4151_s5 + $0x28] sm:$0xff]  ;;  %v2571_v11 = vld [vmem:[%s4151_s5 + $0x18] sm:$0xff]  ;;  %vm2548_vm5 = vcmask 7168  }
   0x5   :  { %v3174_v5 = vand.u32 127, %v43_v2  ;;  %v3185_v9 = vshrl.u32 %v43_v2, 7  ;;  %v2574_v13 = vld [vmem:[%s4151_s5 + $0x30] sm:$0xff]  ;;  %v2575_v18 = vld [vmem:[%s4151_s5 + $0x38] sm:$0xff]  ;;  %v2576_v19 = vld [vmem:[%s4151_s5 + $0x40] sm:$0xff] }
   0x6   :  { %v515_v23 = vld [vmem:[%s4154_s8] sm:$0xff]  ;;  %v2577_v26 = vld [vmem:[%s4151_s5 + $0x48] sm:$0xff]  ;;  %v2578_v36 = vld [vmem:[%s4151_s5 + $0x50] sm:$0xff] }
   0x7   :  { %vm46_vm0 = vcmp.lt.s32.totalorder %v3174_v5, 32  ;;  %v3195_v12 = vadd.s32 24, %v3185_v9  ;;  %vm519_vm3 = vcmp.lt.s32.totalorder %v3174_v5, 27  ;;  %v2580_v30 = vld [vmem:[%s4151_s5 + $0x60] sm:$0xff]  ;;  %v2581_v31 = vld [vmem:[%s4151_s5 + $0x68] sm:$0xff]  ;;  %v2579_v37 = vld [vmem:[%s4151_s5 + $0x58] sm:$0xff] }
   0x8   :  { %v47_v14 = vsel %vm46_vm0, %v37_v3, %v3166_v0  ;;  %v61_v15 = vsel %vm46_vm0, %v2569_v6, %v3166_v0  ;;  %v106_v16 = vsel %vm46_vm0, %v2572_v7, %v3166_v0  ;;  %v121_v17 = vsel %vm46_vm0, %v2573_v8, %v3166_v0  ;;  %v2600_v35 = vld [vmem:[%s4154_s8 + $0x8] sm:$0xff]  ;;  %v2582_v40 = vld [vmem:[%s4151_s5 + $0x70] sm:$0xff]  ;;  %v2583_v41 = vld [vmem:[%s4151_s5 + $0x78] sm:$0xff] }
   0x9   :  { %v2884_v20 = vpack.c.bf16 %v61_v15, %v47_v14  ;;  %v2892_v21 = vpack.c.bf16 %v121_v17, %v106_v16  ;;  %v76_v22 = vsel %vm46_vm0, %v2570_v10, %v3166_v0  ;;  %vm85_vm1 = vcmp.lt.s32.totalorder %v3195_v12, 27  ;;  %v2601_v47 = vld [vmem:[%s4154_s8 + $0x10] sm:$0xff]  ;;  %v2584_v50 = vld [vmem:[%s4151_s5 + $0x80] sm:$0xff]  ;;  %v2585_v55 = vld [vmem:[%s4151_s5 + $0x88] sm:$0xff] }
   0xa   :  { %v86_v24 = vsel %vm85_vm1, %v2571_v11, %v3166_v0  ;;  %v136_v25 = vsel %vm46_vm0, %v2574_v13, %v3166_v0  ;;  %v146_v28 = vsel %vm85_vm1, %v2575_v18, %v3166_v0  ;;  %v166_v29 = vsel %vm46_vm0, %v2576_v19, %v3166_v0  ;;  %v756_v51 = vld [vmem:[%s4146_s0] sm:$0xff]  ;;  %v2589_v57 = vld [vmem:[%s4151_s5 + $0xa8] sm:$0xff]  ;;  %v2602_v58 = vld [vmem:[%s4154_s8 + $0x18] sm:$0xff] }
   0xb   :  { %2885 = vmatprep.subr.bf16.mxu0 %v2884_v20  ;;  %2893 = vmatprep.subr.bf16.mxu1 %v2892_v21  ;;  %v91_v27 = vsel %vm46_vm0, %v86_v24, %v3166_v0  ;;  %v151_v33 = vsel %vm46_vm0, %v146_v28, %v3166_v0  ;;  %v3256_v34 = vsel %vm519_vm3, %v515_v23, %v3166_v0  ;;  %v2588_v56 = vld [vmem:[%s4151_s5 + $0xa0] sm:$0xff]  ;;  %v2587_v60 = vld [vmem:[%s4151_s5 + $0x98] sm:$0xff]  ;;  %v2586_v7 = vld [vmem:[%s4151_s5 + $0x90] sm:$0xff] }
   0xc   :  { %2887 = vmatpush3.bf16.msra.mxu0 %v2884_v20  ;;  %2895 = vmatpush3.bf16.msra.mxu1 %v2892_v21  ;;  %v2888_v32 = vpack.c.bf16 %v91_v27, %v76_v22  ;;  %v2896_v38 = vpack.c.bf16 %v151_v33, %v136_v25  ;;  %v181_v39 = vsel %vm46_vm0, %v2577_v26, %v3166_v0  ;;  %v2591_v61 = vld [vmem:[%s4151_s5 + $0xb8] sm:$0xff]  ;;  %v2590_v11 = vld [vmem:[%s4151_s5 + $0xb0] sm:$0xff]  ;;  %v2592_v20 = vld [vmem:[%s4151_s5 + $0xc0] sm:$0xff] }
   0xd   :  { %2780 = vmatprep.mubr.msk.f32.mxu0 %vm784_vm2, %v3256_v34  ;;  %2794 = vmatprep.mubr.msk.f32.mxu1 %vm784_vm2, %v3256_v34  ;;  %v2900_v42 = vpack.c.bf16 %v181_v39, %v166_v29  ;;  %v226_v43 = vsel %vm46_vm0, %v2580_v30, %v3166_v0  ;;  %v241_v44 = vsel %vm46_vm0, %v2581_v31, %v3166_v0  ;;  %v2593_v21 = vld [vmem:[%s4151_s5 + $0xc8] sm:$0xff]  ;;  %v2596_v22 = vld [vmem:[%s4151_s5 + $0xe0] sm:$0xff]  ;;  %v2595_v24 = vld [vmem:[%s4151_s5 + $0xd8] sm:$0xff] }
   0xe   :  { %2889 = vmatprep.subr.bf16.mxu0 %v2888_v32  ;;  %2897 = vmatprep.subr.bf16.mxu1 %v2896_v38  ;;  %v3289_v45 = vsel %vm519_vm3, %v2600_v35, %v3166_v0  ;;  %v2908_v46 = vpack.c.bf16 %v241_v44, %v226_v43  ;;  %v196_v48 = vsel %vm46_vm0, %v2578_v36, %v3166_v0  ;;  %v2597_v23 = vld [vmem:[%s4151_s5 + $0xe8] sm:$0xff]  ;;  %v2599_v25 = vld [vmem:[%s4151_s5 + $0xf8] sm:$0xff]  ;;  %v2598_v35 = vld [vmem:[%s4151_s5 + $0xf0] sm:$0xff] }
   0xf   :  { %v206_v49 = vsel %vm85_vm1, %v2579_v37, %v3166_v0  ;;  %v256_v53 = vsel %vm46_vm0, %v2582_v40, %v3166_v0  ;;  %v266_v54 = vsel %vm85_vm1, %v2583_v41, %v3166_v0  ;;  %v3339_v62 = vsel %vm519_vm3, %v2601_v47, %v3166_v0  ;;  %766 = vperm.xlu0 %3039, %v756_v51   ;;  %v2603_v5 = vld [vmem:[%s4153_s7 + $0x8] sm:$0xff]  ;;  %v2605_v44 = vld [vmem:[%s4153_s7 + $0x18] sm:$0xff]  ;;  %v553_v47 = vld [vmem:[%s4153_s7] sm:$0xff] }
  0x10   :  { %2891 = vmatpush3.bf16.msra.mxu0 %v2888_v32  ;;  %2899 = vmatpush3.bf16.msra.mxu1 %v2896_v38  ;;  %v211_v52 = vsel %vm46_vm0, %v206_v49, %v3166_v0  ;;  %v271_v59 = vsel %vm46_vm0, %v266_v54, %v3166_v0  ;;  %v286_v2 = vsel %vm46_vm0, %v2584_v50, %v3166_v0  ;;  %v2594_v32 = vld [vmem:[%s4151_s5 + $0xd0] sm:$0xff]  ;;  %v759_v51 = vld [vmem:[%s4146_s0 + $0x18] sm:$0xff] }
  0x11   :  { %2901 = vmatprep.subr.bf16.mxu0 %v2900_v42  ;;  %2909 = vmatprep.subr.bf16.mxu1 %v2908_v46  ;;  %v2904_v63 = vpack.c.bf16 %v211_v52, %v196_v48  ;;  %v2912_v1 = vpack.c.bf16 %v271_v59, %v256_v53  ;;  %v301_v3 = vsel %vm46_vm0, %v2585_v55, %v3166_v0  ;;  %v2604_v48 = vld [vmem:[%s4153_s7 + $0x10] sm:$0xff]  ;;  %v2606_v53 = vld [vmem:[%s4153_s7 + $0x20] sm:$0xff] }
  0x12   :  { %v346_v4 = vsel %vm46_vm0, %v2588_v56, %v3166_v0  ;;  %v361_v6 = vsel %vm46_vm0, %v2589_v57, %v3166_v0  ;;  %v3363_v8 = vsel %vm519_vm3, %v2602_v58, %v3166_v0  ;;  %v326_v10 = vsel %vm85_vm1, %v2587_v60, %v3166_v0  ;;  %v2608_v54 = vld [vmem:[%s4153_s7 + $0x30] sm:$0xff] }
  0x13   :  { %2781 = vmatmul.mubr.msk.f32.vlgmr.msra.gmra.mrb[0].mxu0 %vm784_vm2, %v3289_v45  ;;  %2795 = vmatmul.mubr.msk.f32.vlgmr.msra.gmra.mrb[0].mxu1 %vm784_vm2, %v3289_v45  ;;  %v386_v13 = vsel %vm85_vm1, %v2591_v61, %v3166_v0  ;;  %v2916_v14 = vpack.c.bf16 %v301_v3, %v286_v2  ;;  %v2924_v15 = vpack.c.bf16 %v361_v6, %v346_v4  ;;  %v3106_v56 = vmov 0.0   ;;  %v591_v2 = vld [vmem:[%s4150_s4] sm:$0xff]  ;;  %v2610_v3 = vld [vmem:[%s4150_s4 + $0x8] sm:$0xff] }
  0x14   :  { %2903 = vmatpush3.bf16.msra.mxu0 %v2900_v42  ;;  %2911 = vmatpush3.bf16.msra.mxu1 %v2908_v46  ;;  %v316_v16 = vsel %vm46_vm0, %v2586_v7, %v3166_v0  ;;  %v331_v17 = vsel %vm46_vm0, %v326_v10, %v3166_v0  ;;  %v376_v18 = vsel %vm46_vm0, %v2590_v11, %v3166_v0  ;;  %v758_v46 = vld [vmem:[%s4146_s0 + $0x10] sm:$0xff]  ;;  %v3107_v4 = vmov 0.0|0.0  }
  0x15   :  { %2783 = vmatprep.mubr.msk.f32.mxu0 %vm784_vm2, %v3339_v62  ;;  %2797 = vmatprep.mubr.msk.f32.mxu1 %vm784_vm2, %v3339_v62  ;;  %v391_v19 = vsel %vm46_vm0, %v386_v13, %v3166_v0  ;;  %v2920_v26 = vpack.c.bf16 %v331_v17, %v316_v16  ;;  %v406_v28 = vsel %vm46_vm0, %v2592_v20, %v3166_v0  ;;  %v2611_v13 = vld [vmem:[%s4150_s4 + $0x10] sm:$0xff] }
  0x16   :  { %2905 = vmatprep.subr.bf16.mxu0 %v2904_v63  ;;  %2913 = vmatprep.subr.bf16.mxu1 %v2912_v1  ;;  %v2928_v27 = vpack.c.bf16 %v391_v19, %v376_v18  ;;  %v421_v29 = vsel %vm46_vm0, %v2593_v21, %v3166_v0  ;;  %v466_v30 = vsel %vm46_vm0, %v2596_v22, %v3166_v0 }
  0x17   :  { %2784 = vmatmul.mubr.msk.f32.gmra.mrb[2].mxu0 %vm784_vm2, %v3363_v8  ;;  %2798 = vmatmul.mubr.msk.f32.gmra.mrb[2].mxu1 %vm784_vm2, %v3363_v8  ;;  %v481_v31 = vsel %vm46_vm0, %v2597_v23, %v3166_v0  ;;  %v446_v33 = vsel %vm85_vm1, %v2595_v24, %v3166_v0  ;;  %v506_v36 = vsel %vm85_vm1, %v2599_v25, %v3166_v0  ;;  %v2613_v23 = vld [vmem:[%s4150_s4 + $0x20] sm:$0xff]  ;;  %v2614_v24 = vld [vmem:[%s4150_s4 + $0x28] sm:$0xff] }
  0x18   :  { %2907 = vmatpush3.bf16.msra.mxu0 %v2904_v63  ;;  %2915 = vmatpush3.bf16.msra.mxu1 %v2912_v1  ;;  %v2932_v37 = vpack.c.bf16 %v421_v29, %v406_v28  ;;  %v2940_v38 = vpack.c.bf16 %v481_v31, %v466_v30  ;;  %v436_v39 = vsel %vm46_vm0, %v2594_v32, %v3166_v0  ;;  %v2615_v32 = vld [vmem:[%s4150_s4 + $0x30] sm:$0xff] }
  0x19   :  { %2808 = vmatprep.mubr.msk.f32.mxu0 %vm784_vm2, %v3256_v34  ;;  %2822 = vmatprep.mubr.msk.f32.mxu1 %vm784_vm2, %v3256_v34  ;;  %v451_v12 = vsel %vm46_vm0, %v446_v33, %v3166_v0  ;;  %v496_v40 = vsel %vm46_vm0, %v2598_v35, %v3166_v0  ;;  %v511_v41 = vsel %vm46_vm0, %v506_v36, %v3166_v0  ;;  %v757_v0 = vld [vmem:[%s4146_s0 + $0x8] sm:$0xff]  ;;  %v2616_v33 = vld [vmem:[%s4150_s4 + $0x38] sm:$0xff] }
  0x1a   :  { %2917 = vmatprep.subr.bf16.mxu0 %v2916_v14  ;;  %2925 = vmatprep.subr.bf16.mxu1 %v2924_v15  ;;  %v2936_v42 = vpack.c.bf16 %v451_v12, %v436_v39  ;;  %v2944_v43 = vpack.c.bf16 %v511_v41, %v496_v40  ;;  %v2948_v49 = vpack.c.bf16 %v2605_v44, %v2603_v5  ;;  %v2617_v41 = vld [vmem:[%s4150_s4 + $0x40] sm:$0xff] }
  0x1b   :  { %2809 = vmatmul.mubr.msk.f32.vlgmr.msra.gmra.mrb[4].mxu0 %vm784_vm2, %v3289_v45  ;;  %2823 = vmatmul.mubr.msk.f32.vlgmr.msra.gmra.mrb[4].mxu1 %vm784_vm2, %v3289_v45  ;;  %v2950_v50 = vpack.c.bf16 %v2604_v48, %v553_v47  ;;  %v2954_v55 = vpack.c.bf16 %v2608_v54, %v2606_v53  ;;  %v2957_v6 = vpack.c.bf16 %v2610_v3, %v591_v2 }
  0x1c   :  { %2919 = vmatpush3.bf16.msra.mxu0 %v2916_v14  ;;  %2927 = vmatpush3.bf16.msra.mxu1 %v2924_v15  ;;  %v2612_v14 = vld [vmem:[%s4150_s4 + $0x18] sm:$0xff]  ;;  %v2963_v28 = vpack.c.bf16 %v2614_v24, %v2613_v23 }
  0x1d   :  { %2811 = vmatprep.mubr.msk.f32.mxu0 %vm784_vm2, %v3339_v62  ;;  %2825 = vmatprep.mubr.msk.f32.mxu1 %vm784_vm2, %v3339_v62  ;;  %v2960_v19 = vpack.c.bf16 %v2612_v14, %v2611_v13 }
  0x1e   :  { %2921 = vmatprep.subr.bf16.mxu0 %v2920_v26  ;;  %2929 = vmatprep.subr.bf16.mxu1 %v2928_v27 }
  0x1f   :  { %2812 = vmatmul.mubr.msk.f32.gmra.mrb[6].mxu0 %vm784_vm2, %v3363_v8  ;;  %2826 = vmatmul.mubr.msk.f32.gmra.mrb[6].mxu1 %vm784_vm2, %v3363_v8 }
  0x20   :  { %2923 = vmatpush3.bf16.msra.mxu0 %v2920_v26  ;;  %2931 = vmatpush3.bf16.msra.mxu1 %v2928_v27 }
  0x21   :  { %2836 = vmatprep.mubr.msk.f32.mxu0 %vm784_vm2, %v3256_v34  ;;  %2850 = vmatprep.mubr.msk.f32.mxu1 %vm784_vm2, %v3256_v34 }
  0x22   :  { %2933 = vmatprep.subr.bf16.mxu0 %v2932_v37  ;;  %2941 = vmatprep.subr.bf16.mxu1 %v2940_v38 }
  0x23   :  { %2837 = vmatmul.mubr.msk.f32.vlgmr.msra.gmra.mrb[8].mxu0 %vm784_vm2, %v3289_v45  ;;  %2851 = vmatmul.mubr.msk.f32.vlgmr.msra.gmra.mrb[8].mxu1 %vm784_vm2, %v3289_v45 }
  0x24   :  { %2935 = vmatpush3.bf16.msra.mxu0 %v2932_v37  ;;  %2943 = vmatpush3.bf16.msra.mxu1 %v2940_v38  ;;  %v2966_v37 = vpack.c.bf16 %v2616_v33, %v2615_v32  ;;  %v2629_v32 = vld [vmem:[%s4150_s4 + $0xa0] sm:$0xff]  ;;  %v2630_v33 = vld [vmem:[%s4150_s4 + $0xa8] sm:$0xff] }
  0x25   :  { %2839 = vmatprep.mubr.msk.f32.mxu0 %vm784_vm2, %v3339_v62  ;;  %2853 = vmatprep.mubr.msk.f32.mxu1 %vm784_vm2, %v3339_v62 }
  0x26   :  { %2937 = vmatprep.subr.bf16.mxu0 %v2936_v42  ;;  %2945 = vmatprep.subr.bf16.mxu1 %v2944_v43 }
  0x27   :  { %2840 = vmatmul.mubr.msk.f32.gmra.mrb[10].mxu0 %vm784_vm2, %v3363_v8  ;;  %2854 = vmatmul.mubr.msk.f32.gmra.mrb[10].mxu1 %vm784_vm2, %v3363_v8 }
  0x28   :  { %2939 = vmatpush3.bf16.msra.mxu0 %v2936_v42  ;;  %2947 = vmatpush3.bf16.msra.mxu1 %v2944_v43  ;;  %v2618_v42 = vld [vmem:[%s4150_s4 + $0x48] sm:$0xff] }
  0x29   :  { %2864 = vmatprep.mubr.msk.f32.mxu0 %vm784_vm2, %v3256_v34  ;;  %2878 = vmatprep.mubr.msk.f32.mxu1 %vm784_vm2, %v3256_v34  ;;  %v2607_v34 = vld [vmem:[%s4153_s7 + $0x28] sm:$0xff]  ;;  %v2969_v5 = vpack.c.bf16 %v2618_v42, %v2617_v41  ;;  %v2632_v41 = vld [vmem:[%s4150_s4 + $0xb8] sm:$0xff] }
  0x2a   :  { %771 = vperm.xlu0 %3039, %v757_v0   ;;  %776 = vperm.xlu1 %3040, %v758_v46  }
  0x2b   :  { %2865 = vmatmul.mubr.msk.f32.vlgmr.msra.gmra.mrb[12].mxu0 %vm784_vm2, %v3289_v45  ;;  %2879 = vmatmul.mubr.msk.f32.vlgmr.msra.gmra.mrb[12].mxu1 %vm784_vm2, %v3289_v45  ;;  %v2609_v45 = vld [vmem:[%s4153_s7 + $0x38] sm:$0xff] }
  0x2c   :  { %2867 = vmatprep.mubr.msk.f32.mxu0 %vm784_vm2, %v3339_v62  ;;  %2881 = vmatprep.mubr.msk.f32.mxu1 %vm784_vm2, %v3339_v62  ;;  %v2952_v52 = vpack.c.bf16 %v2609_v45, %v2607_v34 }
  0x2d   :  { %2949 = vmatprep.subr.bf16.mxu0 %v2948_v49  ;;  %3004 = vmatprep.subr.bf16.mxu1 %v3107_v4  ;;  %v2619_v49 = vld [vmem:[%s4150_s4 + $0x50] sm:$0xff] }
  0x2e   :  { %781 = vperm.xlu1 %3040, %v759_v51   ;;  %2951 = vmatpush1.bf16.msra.mxu0 %v2950_v50  ;;  %v2620_v50 = vld [vmem:[%s4150_s4 + $0x58] sm:$0xff] }
  0x2f   :  { %2868 = vmatmul.mubr.msk.f32.gmra.mrb[14].mxu0 %vm784_vm2, %v3363_v8  ;;  %2882 = vmatmul.mubr.msk.f32.gmra.mrb[14].mxu1 %vm784_vm2, %v3363_v8  ;;  %v2972_v45 = vpack.c.bf16 %v2620_v50, %v2619_v49 }
  0x30   :  { %2953 = vmatprep.subr.bf16.mxu0 %v2952_v52  ;;  %1724 = vmatprep.mubr.f32.mxu0 %v3106_v56 }
  0x31   :  { %3020 = vmatpush1.bf16.msra.mxu1 %v2957_v6 }
  0x32   :  { %2955 = vmatpush1.bf16.msra.mxu0 %v2954_v55  ;;  %3005 = vmatprep.subr.bf16.mxu1 %v3107_v4 }
  0x33   :  { %2956 = vmatprep.subr.bf16.mxu0 %v3107_v4 }
  0x35   :  { %3021 = vmatpush1.bf16.msra.mxu1 %v2960_v19 }
  0x36   :  { %3006 = vmatprep.subr.bf16.mxu1 %v3107_v4 }
  0x39   :  { %3022 = vmatpush1.bf16.msra.mxu1 %v2963_v28 }
  0x3a   :  { %3007 = vmatprep.subr.bf16.mxu1 %v3107_v4 }
  0x3d   :  { %3023 = vmatpush1.bf16.msra.mxu1 %v2966_v37 }
  0x3e   :  { %3008 = vmatprep.subr.bf16.mxu1 %v3107_v4 }
  0x41   :  { %3024 = vmatpush1.bf16.msra.mxu1 %v2969_v5 }
  0x42   :  { %3009 = vmatprep.subr.bf16.mxu1 %v3107_v4 }
  0x45   :  { %3025 = vmatpush1.bf16.msra.mxu1 %v2972_v45 }
  0x46   :  { %3010 = vmatprep.subr.bf16.mxu1 %v3107_v4 }
  0x8e   :  { %v3530_v57 = vpop.permute.xlu0 %766 }
  0xa9   :  { %v3532_v58 = vpop.permute.xlu0 %771  ;;  %v3534_v59 = vpop.permute.xlu1 %776 }
  0xad   :  { %v3561_v18 = vpop.permute.xlu1 %781 }
  0xe6   :  { %v2782_v60 = vpop.f32.mrb[0].mxu0  ;;  %v3536_v61 = vpop.f32.mrb[0].mxu1 }
  0xe7   :  { %v863_v62 = vpop.f32.mrb[1].mxu0  ;;  %v957_v63 = vpop.f32.mrb[1].mxu1  ;;  %v869_v7 = vadd.f32 %v2782_v60, %v3532_v58  ;;  %v963_v44 = vadd.f32 %v3536_v61, %v3532_v58  ;;  %v2621_v60 = vld [vmem:[%s4150_s4 + $0x60] sm:$0xff]  ;;  %v2622_v61 = vld [vmem:[%s4150_s4 + $0x68] sm:$0xff] }
  0xe8   :  { %v864_v1 = vadd.f32 %v863_v62, %v3530_v57  ;;  %v958_v38 = vadd.f32 %v957_v63, %v3530_v57 }
  0xe9   :  { %v883_v20 = vmax.f32 %v869_v7, 0.0  ;;  %v977_v52 = vmax.f32 %v963_v44, 0.0  ;;  %v2633_v44 = vld [vmem:[%s4150_s4 + $0xc0] sm:$0xff] }
  0xea   :  { %v882_v8 = vmax.f32 %v864_v1, 0.0  ;;  %v2785_v10 = vpop.f32.mrb[2].mxu0  ;;  %v3548_v11 = vpop.f32.mrb[2].mxu1  ;;  %v976_v46 = vmax.f32 %v958_v38, 0.0  ;;  %v2975_v1 = vpack.c.bf16 %v2622_v61, %v2621_v60 }
  0xeb   :  { %v873_v15 = vpop.f32.mrb[3].mxu0  ;;  %v3556_v16 = vpop.f32.mrb[3].mxu1  ;;  %v879_v31 = vadd.f32 %v2785_v10, %v3561_v18  ;;  %v973_v7 = vadd.f32 %v3548_v11, %v3561_v18  ;;  %v2624_v10 = vld [vmem:[%s4150_s4 + $0x78] sm:$0xff] }
  0xec   :  { %2673 = vmatmul.mubr.msk.f32.vlgmr.msra.gmra.mrb[16].mxu0 %vm784_vm2, %v882_v8  ;;  %v874_v17 = vadd.f32 %v873_v15, %v3534_v59  ;;  %v968_v53 = vadd.f32 %v3556_v16, %v3534_v59  ;;  %v2623_v8 = vld [vmem:[%s4150_s4 + $0x70] sm:$0xff]  ;;  %3026 = vmatpush1.bf16.msra.mxu1 %v2975_v1 }
  0xed   :  { %1730 = vmatprep.mubr.f32.mxu0 %v3106_v56  ;;  %2958 = vmatpush1.bf16.msra.mxu0 %v2957_v6  ;;  %v885_v40 = vmax.f32 %v879_v31, 0.0  ;;  %v2978_v11 = vpack.c.bf16 %v2624_v10, %v2623_v8  ;;  %v979_v16 = vmax.f32 %v973_v7, 0.0 }
  0xee   :  { %v3564_v21 = vpop.f32.mrb[4].mxu0  ;;  %v3566_v22 = vpop.f32.mrb[4].mxu1  ;;  %2959 = vmatprep.subr.bf16.mxu0 %v3107_v4  ;;  %v884_v27 = vmax.f32 %v874_v17, 0.0  ;;  %v978_v2 = vmax.f32 %v968_v53, 0.0  ;;  %3011 = vmatprep.subr.bf16.mxu1 %v3107_v4  ;;  %v2625_v17 = vld [vmem:[%s4150_s4 + $0x80] sm:$0xff] }
  0xef   :  { %v3575_v25 = vpop.f32.mrb[5].mxu0  ;;  %v3577_v26 = vpop.f32.mrb[5].mxu1  ;;  %v1057_v23 = vadd.f32 %v3564_v21, %v3532_v58  ;;  %v1151_v49 = vadd.f32 %v3566_v22, %v3532_v58 }
  0xf0   :  { %2674 = vmatmul.mubr.msk.f32.gmra.mrb[18].mxu0 %vm784_vm2, %v883_v20  ;;  %v1052_v15 = vadd.f32 %v3575_v25, %v3530_v57  ;;  %3027 = vmatpush1.bf16.msra.mxu1 %v2978_v11  ;;  %v2627_v25 = vld [vmem:[%s4150_s4 + $0x90] sm:$0xff]  ;;  %v1146_v42 = vadd.f32 %v3577_v26, %v3530_v57 }
  0xf1   :  { %1736 = vmatprep.mubr.f32.mxu0 %v3106_v56  ;;  %2961 = vmatpush1.bf16.msra.mxu0 %v2960_v19  ;;  %v2626_v19 = vld [vmem:[%s4150_s4 + $0x88] sm:$0xff]  ;;  %v1165_v53 = vmax.f32 %v1151_v49, 0.0 }
  0xf2   :  { %v3582_v29 = vpop.f32.mrb[6].mxu0  ;;  %v3584_v30 = vpop.f32.mrb[6].mxu1  ;;  %2962 = vmatprep.subr.bf16.mxu0 %v3107_v4  ;;  %3012 = vmatprep.subr.bf16.mxu1 %v3107_v4  ;;  %v2981_v20 = vpack.c.bf16 %v2626_v19, %v2625_v17  ;;  %v1070_v24 = vmax.f32 %v1052_v15, 0.0  ;;  %v1164_v50 = vmax.f32 %v1146_v42, 0.0  ;;  %v2638_v17 = vld [vmem:[%s4150_s4 + $0xe8] sm:$0xff] }
  0xf3   :  { %v3594_v35 = vpop.f32.mrb[7].mxu0  ;;  %v3596_v36 = vpop.f32.mrb[7].mxu1  ;;  %v1161_v61 = vadd.f32 %v3584_v30, %v3561_v18 }
  0xf4   :  { %2675 = vmatmul.mubr.msk.f32.gmra.mrb[20].mxu0 %vm784_vm2, %v884_v27  ;;  %v2628_v27 = vld [vmem:[%s4150_s4 + $0x98] sm:$0xff]  ;;  %3028 = vmatpush1.bf16.msra.mxu1 %v2981_v20  ;;  %v1062_v31 = vadd.f32 %v3594_v35, %v3534_v59  ;;  %v1067_v35 = vadd.f32 %v3582_v29, %v3561_v18  ;;  %v1156_v60 = vadd.f32 %v3596_v36, %v3534_v59 }
  0xf5   :  { %1742 = vmatprep.mubr.f32.mxu0 %v3106_v56  ;;  %2964 = vmatpush1.bf16.msra.mxu0 %v2963_v28  ;;  %v2984_v21 = vpack.c.bf16 %v2628_v27, %v2627_v25  ;;  %v1071_v28 = vmax.f32 %v1057_v23, 0.0  ;;  %v1167_v36 = vmax.f32 %v1161_v61, 0.0  ;;  %v2640_v23 = vld [vmem:[%s4150_s4 + $0xf8] sm:$0xff] }
  0xf6   :  { %v3602_v39 = vpop.f32.mrb[8].mxu0  ;;  %v3604_v12 = vpop.f32.mrb[8].mxu1  ;;  %2965 = vmatprep.subr.bf16.mxu0 %v3107_v4  ;;  %3013 = vmatprep.subr.bf16.mxu1 %v3107_v4  ;;  %v1072_v38 = vmax.f32 %v1062_v31, 0.0 }
  0xf7   :  { %v3613_v43 = vpop.f32.mrb[9].mxu0  ;;  %v3615_v0 = vpop.f32.mrb[9].mxu1  ;;  %v1245_v7 = vadd.f32 %v3602_v39, %v3532_v58 }
  0xf8   :  { %2676 = vmatmul.mubr.msk.f32.gmra.mrb[22].mxu0 %vm784_vm2, %v885_v40  ;;  %3029 = vmatpush1.bf16.msra.mxu1 %v2984_v21  ;;  %v2631_v40 = vld [vmem:[%s4150_s4 + $0xb0] sm:$0xff]  ;;  %v1334_v39 = vadd.f32 %v3615_v0, %v3530_v57 }
  0xf9   :  { %1748 = vmatprep.mubr.f32.mxu0 %v3106_v56  ;;  %2967 = vmatpush1.bf16.msra.mxu0 %v2966_v37  ;;  %v2987_v37 = vpack.c.bf16 %v2630_v33, %v2629_v32  ;;  %v2990_v29 = vpack.c.bf16 %v2632_v41, %v2631_v40  ;;  %v1259_v30 = vmax.f32 %v1245_v7, 0.0 }
  0xfa   :  { %v3622_v47 = vpop.f32.mrb[10].mxu0  ;;  %v3624_v48 = vpop.f32.mrb[10].mxu1  ;;  %2968 = vmatprep.subr.bf16.mxu0 %v3107_v4  ;;  %3014 = vmatprep.subr.bf16.mxu1 %v3107_v4 }
  0xfb   :  { %v3633_v51 = vpop.f32.mrb[11].mxu0  ;;  %v3635_v34 = vpop.f32.mrb[11].mxu1 }
  0xfc   :  { %2677 = vmatmul.mubr.msk.f32.gmra.mrb[24].mxu0 %vm784_vm2, %v976_v46  ;;  %3030 = vmatpush1.bf16.msra.mxu1 %v2987_v37  ;;  %v2634_v46 = vld [vmem:[%s4150_s4 + $0xc8] sm:$0xff]  ;;  %v1250_v10 = vadd.f32 %v3633_v51, %v3534_v59  ;;  %v1339_v51 = vadd.f32 %v3604_v12, %v3532_v58  ;;  %v2639_v12 = vld [vmem:[%s4150_s4 + $0xf0] sm:$0xff] }
  0xfd   :  { %1754 = vmatprep.mubr.f32.mxu0 %v3106_v56  ;;  %2970 = vmatpush1.bf16.msra.mxu0 %v2969_v5  ;;  %v1073_v5 = vmax.f32 %v1067_v35, 0.0  ;;  %v2993_v26 = vpack.c.bf16 %v2634_v46, %v2633_v44 }
  0xfe   :  { %v3642_v54 = vpop.f32.mrb[12].mxu0  ;;  %v3644_v55 = vpop.f32.mrb[12].mxu1  ;;  %2971 = vmatprep.subr.bf16.mxu0 %v3107_v4  ;;  %3015 = vmatprep.subr.bf16.mxu1 %v3107_v4  ;;  %v1353_v19 = vmax.f32 %v1339_v51, 0.0 }
  0xff   :  { %v3653_v62 = vpop.f32.mrb[13].mxu0  ;;  %v3655_v63 = vpop.f32.mrb[13].mxu1 }
 0x100   :  { %2678 = vmatmul.mubr.msk.f32.gmra.mrb[26].mxu0 %vm784_vm2, %v977_v52  ;;  %3031 = vmatpush1.bf16.msra.mxu1 %v2990_v29  ;;  %v2636_v52 = vld [vmem:[%s4150_s4 + $0xd8] sm:$0xff] }
 0x101   :  { %1760 = vmatprep.mubr.f32.mxu0 %v3106_v56  ;;  %2973 = vmatpush1.bf16.msra.mxu0 %v2972_v45  ;;  %v2635_v45 = vld [vmem:[%s4150_s4 + $0xd0] sm:$0xff] }
 0x102   :  { %v3660_v3 = vpop.f32.mrb[14].mxu0  ;;  %v3662_v6 = vpop.f32.mrb[14].mxu1  ;;  %2974 = vmatprep.subr.bf16.mxu0 %v3107_v4  ;;  %3016 = vmatprep.subr.bf16.mxu1 %v3107_v4  ;;  %v2996_v22 = vpack.c.bf16 %v2636_v52, %v2635_v45 }
 0x103   :  { %v3673_v13 = vpop.f32.mrb[15].mxu0  ;;  %v3675_v14 = vpop.f32.mrb[15].mxu1 }
 0x104   :  { %2679 = vmatmul.mubr.msk.f32.gmra.mrb[28].mxu0 %vm784_vm2, %v978_v2  ;;  %3032 = vmatpush1.bf16.msra.mxu1 %v2993_v26  ;;  %v1240_v2 = vadd.f32 %v3613_v43, %v3530_v57  ;;  %v1255_v43 = vadd.f32 %v3622_v47, %v3561_v18  ;;  %v2637_v47 = vld [vmem:[%s4150_s4 + $0xe0] sm:$0xff]  ;;  %v1438_v31 = vadd.f32 %v3673_v13, %v3534_v59 }
 0x105   :  { %1766 = vmatprep.mubr.f32.mxu0 %v3106_v56  ;;  %2976 = vmatpush1.bf16.msra.mxu0 %v2975_v1  ;;  %v1166_v1 = vmax.f32 %v1156_v60, 0.0  ;;  %v2999_v0 = vpack.c.bf16 %v2638_v17, %v2637_v47  ;;  %v1527_v13 = vadd.f32 %v3644_v55, %v3532_v58  ;;  %v1532_v35 = vadd.f32 %v3675_v14, %v3534_v59 }
 0x106   :  { %2977 = vmatprep.subr.bf16.mxu0 %v3107_v4  ;;  %3017 = vmatprep.subr.bf16.mxu1 %v3107_v4  ;;  %v1258_v8 = vmax.f32 %v1240_v2, 0.0  ;;  %v1261_v15 = vmax.f32 %v1255_v43, 0.0  ;;  %v1448_v32 = vmax.f32 %v1438_v31, 0.0  ;;  %v1556_v55 = vsub.s32 0, %v3185_v9 }
 0x107   :  { %v1560_v14 = vsub.s32 1, %v3185_v9 }
 0x108   :  { %2680 = vmatmul.mubr.msk.f32.gmra.mrb[30].mxu0 %vm784_vm2, %v979_v16  ;;  %3033 = vmatpush1.bf16.msra.mxu1 %v2996_v22  ;;  %v1352_v16 = vmax.f32 %v1334_v39, 0.0 }
 0x109   :  { %1772 = vmatprep.mubr.f32.mxu0 %v3106_v56  ;;  %2979 = vmatpush1.bf16.msra.mxu0 %v2978_v11  ;;  %v1260_v11 = vmax.f32 %v1250_v10, 0.0 }
 0x10a   :  { %2980 = vmatprep.subr.bf16.mxu0 %v3107_v4  ;;  %3018 = vmatprep.subr.bf16.mxu1 %v3107_v4 }
 0x10c   :  { %2681 = vmatmul.mubr.msk.f32.gmra.mrb[32].mxu0 %vm784_vm2, %v1070_v24  ;;  %3034 = vmatpush1.bf16.msra.mxu1 %v2999_v0  ;;  %v3002_v24 = vpack.c.bf16 %v2640_v23, %v2639_v12 }
 0x10d   :  { %1778 = vmatprep.mubr.f32.mxu0 %v3106_v56  ;;  %2982 = vmatpush1.bf16.msra.mxu0 %v2981_v20  ;;  %v1344_v20 = vadd.f32 %v3635_v34, %v3534_v59  ;;  %v1349_v34 = vadd.f32 %v3624_v48, %v3561_v18  ;;  %v1552_v59 = vld [vmem:[%s4147_s1] sm:$0x3] }
 0x10e   :  { %2983 = vmatprep.subr.bf16.mxu0 %v3107_v4  ;;  %3019 = vmatprep.subr.bf16.mxu1 %v3107_v4  ;;  %v3849_v40 = vrot.slane %v1552_v59, %v1560_v14 }
 0x10f   :  { %v1354_v25 = vmax.f32 %v1344_v20, 0.0  ;;  %v1355_v27 = vmax.f32 %v1349_v34, 0.0 }
 0x110   :  { %2682 = vmatmul.mubr.msk.f32.gmra.mrb[34].mxu0 %vm784_vm2, %v1071_v28  ;;  %3035 = vmatpush1.bf16.msra.mxu1 %v3002_v24 }
 0x111   :  { %1784 = vmatprep.mubr.f32.mxu0 %v3106_v56  ;;  %2985 = vmatpush1.bf16.msra.mxu0 %v2984_v21  ;;  %v1428_v21 = vadd.f32 %v3653_v62, %v3530_v57  ;;  %v1443_v62 = vadd.f32 %v3660_v3, %v3561_v18  ;;  %v1541_v3 = vmax.f32 %v1527_v13, 0.0 }
 0x112   :  { %2986 = vmatprep.subr.bf16.mxu0 %v3107_v4 }
 0x113   :  { %v1446_v28 = vmax.f32 %v1428_v21, 0.0  ;;  %v1449_v33 = vmax.f32 %v1443_v62, 0.0 }
 0x114   :  { %2683 = vmatmul.mubr.msk.f32.gmra.mrb[36].mxu0 %vm784_vm2, %v1072_v38  ;;  %v3847_v38 = vrot.slane %v1552_v59, %v1556_v55 }
 0x115   :  { %1790 = vmatprep.mubr.f32.mxu0 %v3106_v56  ;;  %2988 = vmatpush1.bf16.msra.mxu0 %v2987_v37 }
 0x116   :  { %2989 = vmatprep.subr.bf16.mxu0 %v3107_v4 }
 0x118   :  { %2684 = vmatmul.mubr.msk.f32.gmra.mrb[38].mxu0 %vm784_vm2, %v1073_v5 }
 0x119   :  { %1796 = vmatprep.mubr.f32.mxu0 %v3106_v56  ;;  %2991 = vmatpush1.bf16.msra.mxu0 %v2990_v29  ;;  %v749_v29 = vld [vmem:[%s4155_s9] sm:$0x1] }
 0x11a   :  { %2992 = vmatprep.subr.bf16.mxu0 %v3107_v4  ;;  %751 = vst [vmem:[#allocation17] sm:$0x1] %v749_v29 }
 0x11c   :  { %2685 = vmatmul.mubr.msk.f32.gmra.mrb[40].mxu0 %vm784_vm2, %v1164_v50 }
 0x11d   :  { %1802 = vmatprep.mubr.f32.mxu0 %v3106_v56  ;;  %2994 = vmatpush1.bf16.msra.mxu0 %v2993_v26 }
 0x11e   :  { %2995 = vmatprep.subr.bf16.mxu0 %v3107_v4 }
 0x120   :  { %2686 = vmatmul.mubr.msk.f32.gmra.mrb[42].mxu0 %vm784_vm2, %v1165_v53 }
 0x121   :  { %1808 = vmatprep.mubr.f32.mxu0 %v3106_v56  ;;  %2997 = vmatpush1.bf16.msra.mxu0 %v2996_v22 }
 0x122   :  { %2998 = vmatprep.subr.bf16.mxu0 %v3107_v4 }
 0x124   :  { %2687 = vmatmul.mubr.msk.f32.gmra.mrb[44].mxu0 %vm784_vm2, %v1166_v1 }
 0x125   :  { %1814 = vmatprep.mubr.f32.mxu0 %v3106_v56  ;;  %3000 = vmatpush1.bf16.msra.mxu0 %v2999_v0 }
 0x126   :  { %3001 = vmatprep.subr.bf16.mxu0 %v3107_v4  ;;  %v1433_v4 = vadd.f32 %v3642_v54, %v3532_v58  ;;  %v1522_v54 = vadd.f32 %v3655_v63, %v3530_v57  ;;  %v1537_v57 = vadd.f32 %v3662_v6, %v3561_v18  ;;  %v1542_v63 = vmax.f32 %v1532_v35, 0.0 }
 0x128   :  { %2688 = vmatmul.mubr.msk.f32.gmra.mrb[46].mxu0 %vm784_vm2, %v1167_v36  ;;  %v1447_v48 = vmax.f32 %v1433_v4, 0.0  ;;  %v1540_v37 = vmax.f32 %v1522_v54, 0.0  ;;  %v1543_v58 = vmax.f32 %v1537_v57, 0.0 }
 0x129   :  { %1820 = vmatprep.mubr.f32.mxu0 %v3106_v56  ;;  %3003 = vmatpush1.bf16.msra.mxu0 %v3002_v24 }
 0x12c   :  { %2689 = vmatmul.mubr.msk.f32.gmra.mrb[48].mxu0 %vm784_vm2, %v1258_v8 }
 0x12d   :  { %1826 = vmatprep.mubr.f32.mxu0 %v3106_v56 }
 0x130   :  { %2690 = vmatmul.mubr.msk.f32.gmra.mrb[50].mxu0 %vm784_vm2, %v1259_v30 }
 0x131   :  { %1832 = vmatprep.mubr.f32.mxu0 %v3106_v56 }
 0x134   :  { %2691 = vmatmul.mubr.msk.f32.gmra.mrb[52].mxu0 %vm784_vm2, %v1260_v11 }
 0x135   :  { %1838 = vmatprep.mubr.f32.mxu0 %v3106_v56 }
 0x138   :  { %2692 = vmatmul.mubr.msk.f32.gmra.mrb[54].mxu0 %vm784_vm2, %v1261_v15 }
 0x139   :  { %1844 = vmatprep.mubr.f32.mxu0 %v3106_v56 }
 0x13c   :  { %2693 = vmatmul.mubr.msk.f32.gmra.mrb[56].mxu0 %vm784_vm2, %v1352_v16 }
 0x13d   :  { %1850 = vmatprep.mubr.f32.mxu0 %v3106_v56 }
 0x140   :  { %2694 = vmatmul.mubr.msk.f32.gmra.mrb[58].mxu0 %vm784_vm2, %v1353_v19 }
 0x141   :  { %1856 = vmatprep.mubr.f32.mxu0 %v3106_v56 }
 0x144   :  { %2695 = vmatmul.mubr.msk.f32.gmra.mrb[60].mxu0 %vm784_vm2, %v1354_v25 }
 0x145   :  { %1862 = vmatprep.mubr.f32.mxu0 %v3106_v56 }
 0x148   :  { %2696 = vmatmul.mubr.msk.f32.gmra.mrb[62].mxu0 %vm784_vm2, %v1355_v27 }
 0x149   :  { %1868 = vmatprep.mubr.f32.mxu0 %v3106_v56 }
 0x14c   :  { %2697 = vmatmul.mubr.msk.f32.gmra.mrb[64].mxu0 %vm784_vm2, %v1446_v28 }
 0x14d   :  { %1874 = vmatprep.mubr.f32.mxu0 %v3106_v56 }
 0x150   :  { %2698 = vmatmul.mubr.msk.f32.gmra.mrb[66].mxu0 %vm784_vm2, %v1447_v48 }
 0x151   :  { %1880 = vmatprep.mubr.f32.mxu0 %v3106_v56 }
 0x154   :  { %2699 = vmatmul.mubr.msk.f32.gmra.mrb[68].mxu0 %vm784_vm2, %v1448_v32 }
 0x155   :  { %1886 = vmatprep.mubr.f32.mxu0 %v3106_v56 }
 0x158   :  { %2700 = vmatmul.mubr.msk.f32.gmra.mrb[70].mxu0 %vm784_vm2, %v1449_v33 }
 0x159   :  { %1892 = vmatprep.mubr.f32.mxu0 %v3106_v56 }
 0x15c   :  { %2701 = vmatmul.mubr.msk.f32.gmra.mrb[72].mxu0 %vm784_vm2, %v1540_v37 }
 0x15d   :  { %1898 = vmatprep.mubr.f32.mxu0 %v3106_v56 }
 0x160   :  { %2702 = vmatmul.mubr.msk.f32.gmra.mrb[74].mxu0 %vm784_vm2, %v1541_v3 }
 0x161   :  { %1904 = vmatprep.mubr.f32.mxu0 %v3106_v56 }
 0x164   :  { %2703 = vmatmul.mubr.msk.f32.gmra.mrb[76].mxu0 %vm784_vm2, %v1542_v63 }
 0x165   :  { %1910 = vmatprep.mubr.f32.mxu0 %v3106_v56 }
 0x168   :  { %2704 = vmatmul.mubr.msk.f32.gmra.mrb[78].mxu0 %vm784_vm2, %v1543_v58 }
 0x1bf   :  { %v1726_v18 = vpop.f32.mrb[16].mxu0 }
 0x1c0   :  { %v1727_v6 = vadd.f32 %v1726_v18, %v3847_v38  ;;  %v1728_v41 = vpop.f32.mrb[17].mxu0 }
 0x1c1   :  { %v1729_v56 = vadd.f32 %v1728_v41, %v3849_v40 }
 0x1c2   :  { %v1917_v44 = vmax.f32 %v1727_v6, 0.0 }
 0x1c3   :  { %v1918_v42 = vmax.f32 %v1729_v56, 0.0  ;;  %v1732_v5 = vpop.f32.mrb[18].mxu0 }
 0x1c4   :  { %v1733_v9 = vadd.f32 %v1732_v5, %v3847_v38  ;;  %v1734_v46 = vpop.f32.mrb[19].mxu0 }
 0x1c5   :  { %v1735_v26 = vadd.f32 %v1734_v46, %v3849_v40  ;;  %2084 = vmatprep.mubr.f32.mxu0 %v1918_v42 }
 0x1c6   :  { %2085 = vmatmul.mubr.f32.vlgmr.msra.gmra.mrb[80].mxu0 %v1917_v44  ;;  %v1919_v45 = vmax.f32 %v1733_v9, 0.0 }
 0x1c7   :  { %v1920_v49 = vmax.f32 %v1735_v26, 0.0  ;;  %v1738_v50 = vpop.f32.mrb[20].mxu0 }
 0x1c8   :  { %v1739_v52 = vadd.f32 %v1738_v50, %v3847_v38  ;;  %v1740_v22 = vpop.f32.mrb[21].mxu0 }
 0x1c9   :  { %v1741_v53 = vadd.f32 %v1740_v22, %v3849_v40  ;;  %2089 = vmatprep.mubr.f32.mxu0 %v1920_v49 }
 0x1ca   :  { %2090 = vmatmul.mubr.f32.gmra.mrb[82].mxu0 %v1919_v45  ;;  %v1921_v1 = vmax.f32 %v1739_v52, 0.0 }
 0x1cb   :  { %v1922_v60 = vmax.f32 %v1741_v53, 0.0  ;;  %v1744_v61 = vpop.f32.mrb[22].mxu0 }
 0x1cc   :  { %v1745_v36 = vadd.f32 %v1744_v61, %v3847_v38  ;;  %v1746_v2 = vpop.f32.mrb[23].mxu0 }
 0x1cd   :  { %v1747_v7 = vadd.f32 %v1746_v2, %v3849_v40  ;;  %2094 = vmatprep.mubr.f32.mxu0 %v1922_v60 }
 0x1ce   :  { %2095 = vmatmul.mubr.f32.gmra.mrb[84].mxu0 %v1921_v1  ;;  %v1923_v10 = vmax.f32 %v1745_v36, 0.0 }
 0x1cf   :  { %v1924_v8 = vmax.f32 %v1747_v7, 0.0  ;;  %v1750_v30 = vpop.f32.mrb[24].mxu0 }
 0x1d0   :  { %v1751_v43 = vadd.f32 %v1750_v30, %v3847_v38  ;;  %v1752_v11 = vpop.f32.mrb[25].mxu0 }
 0x1d1   :  { %v1753_v39 = vadd.f32 %v1752_v11, %v3849_v40  ;;  %2099 = vmatprep.mubr.f32.mxu0 %v1924_v8 }
 0x1d2   :  { %2100 = vmatmul.mubr.f32.gmra.mrb[86].mxu0 %v1923_v10  ;;  %v1925_v16 = vmax.f32 %v1751_v43, 0.0 }
 0x1d3   :  { %v1926_v15 = vmax.f32 %v1753_v39, 0.0  ;;  %v1756_v51 = vpop.f32.mrb[26].mxu0 }
 0x1d4   :  { %v1757_v47 = vadd.f32 %v1756_v51, %v3847_v38  ;;  %v1758_v17 = vpop.f32.mrb[27].mxu0 }
 0x1d5   :  { %v1759_v0 = vadd.f32 %v1758_v17, %v3849_v40  ;;  %2104 = vmatprep.mubr.f32.mxu0 %v1926_v15 }
 0x1d6   :  { %2105 = vmatmul.mubr.f32.gmra.mrb[88].mxu0 %v1925_v16  ;;  %v1927_v12 = vmax.f32 %v1757_v47, 0.0 }
 0x1d7   :  { %v1928_v19 = vmax.f32 %v1759_v0, 0.0  ;;  %v1762_v20 = vpop.f32.mrb[28].mxu0 }
 0x1d8   :  { %v1763_v23 = vadd.f32 %v1762_v20, %v3847_v38  ;;  %v1764_v24 = vpop.f32.mrb[29].mxu0 }
 0x1d9   :  { %v1765_v34 = vadd.f32 %v1764_v24, %v3849_v40  ;;  %2109 = vmatprep.mubr.f32.mxu0 %v1928_v19 }
 0x1da   :  { %2110 = vmatmul.mubr.f32.gmra.mrb[90].mxu0 %v1927_v12  ;;  %v1929_v21 = vmax.f32 %v1763_v23, 0.0 }
 0x1db   :  { %v1930_v25 = vmax.f32 %v1765_v34, 0.0  ;;  %v1768_v27 = vpop.f32.mrb[30].mxu0 }
 0x1dc   :  { %v1769_v4 = vadd.f32 %v1768_v27, %v3847_v38  ;;  %v1770_v28 = vpop.f32.mrb[31].mxu0 }
 0x1dd   :  { %v1771_v48 = vadd.f32 %v1770_v28, %v3849_v40  ;;  %2114 = vmatprep.mubr.f32.mxu0 %v1930_v25 }
 0x1de   :  { %2115 = vmatmul.mubr.f32.gmra.mrb[92].mxu0 %v1929_v21  ;;  %v1931_v32 = vmax.f32 %v1769_v4, 0.0 }
 0x1df   :  { %v1932_v31 = vmax.f32 %v1771_v48, 0.0  ;;  %v1774_v62 = vpop.f32.mrb[32].mxu0 }
 0x1e0   :  { %v1775_v54 = vadd.f32 %v1774_v62, %v3847_v38  ;;  %v1776_v33 = vpop.f32.mrb[33].mxu0 }
 0x1e1   :  { %v1777_v13 = vadd.f32 %v1776_v33, %v3849_v40  ;;  %2119 = vmatprep.mubr.f32.mxu1 %v1932_v31 }
 0x1e2   :  { %2120 = vmatmul.mubr.f32.vlgmr.msra.gmra.mrb[16].mxu1 %v1931_v32  ;;  %v1933_v35 = vmax.f32 %v1775_v54, 0.0 }
 0x1e3   :  { %v1934_v37 = vmax.f32 %v1777_v13, 0.0  ;;  %v1780_v3 = vpop.f32.mrb[34].mxu0 }
 0x1e4   :  { %v1781_v57 = vadd.f32 %v1780_v3, %v3847_v38  ;;  %v1782_v63 = vpop.f32.mrb[35].mxu0 }
 0x1e5   :  { %v1783_v58 = vadd.f32 %v1782_v63, %v3849_v40  ;;  %2124 = vmatprep.mubr.f32.mxu1 %v1934_v37 }
 0x1e6   :  { %2125 = vmatmul.mubr.f32.gmra.mrb[18].mxu1 %v1933_v35  ;;  %v1935_v14 = vmax.f32 %v1781_v57, 0.0 }
 0x1e7   :  { %v1936_v55 = vmax.f32 %v1783_v58, 0.0  ;;  %v1786_v59 = vpop.f32.mrb[36].mxu0 }
 0x1e8   :  { %v1787_v18 = vadd.f32 %v1786_v59, %v3847_v38  ;;  %v1788_v6 = vpop.f32.mrb[37].mxu0 }
 0x1e9   :  { %v1789_v41 = vadd.f32 %v1788_v6, %v3849_v40  ;;  %2129 = vmatprep.mubr.f32.mxu1 %v1936_v55 }
 0x1ea   :  { %2130 = vmatmul.mubr.f32.gmra.mrb[20].mxu1 %v1935_v14  ;;  %v1937_v42 = vmax.f32 %v1787_v18, 0.0 }
 0x1eb   :  { %v1938_v56 = vmax.f32 %v1789_v41, 0.0  ;;  %v1792_v29 = vpop.f32.mrb[38].mxu0 }
 0x1ec   :  { %v1793_v5 = vadd.f32 %v1792_v29, %v3847_v38  ;;  %v1794_v44 = vpop.f32.mrb[39].mxu0 }
 0x1ed   :  { %v1795_v9 = vadd.f32 %v1794_v44, %v3849_v40  ;;  %2134 = vmatprep.mubr.f32.mxu1 %v1938_v56 }
 0x1ee   :  { %2135 = vmatmul.mubr.f32.gmra.mrb[22].mxu1 %v1937_v42  ;;  %v1939_v49 = vmax.f32 %v1793_v5, 0.0 }
 0x1ef   :  { %v1940_v46 = vmax.f32 %v1795_v9, 0.0  ;;  %v1798_v26 = vpop.f32.mrb[40].mxu0 }
 0x1f0   :  { %v1799_v50 = vadd.f32 %v1798_v26, %v3847_v38  ;;  %v1800_v45 = vpop.f32.mrb[41].mxu0 }
 0x1f1   :  { %v1801_v52 = vadd.f32 %v1800_v45, %v3849_v40  ;;  %2139 = vmatprep.mubr.f32.mxu1 %v1940_v46 }
 0x1f2   :  { %2140 = vmatmul.mubr.f32.gmra.mrb[24].mxu1 %v1939_v49  ;;  %v1941_v60 = vmax.f32 %v1799_v50, 0.0 }
 0x1f3   :  { %v1942_v22 = vmax.f32 %v1801_v52, 0.0  ;;  %v1804_v53 = vpop.f32.mrb[42].mxu0 }
 0x1f4   :  { %v1805_v61 = vadd.f32 %v1804_v53, %v3847_v38  ;;  %v1806_v1 = vpop.f32.mrb[43].mxu0 }
 0x1f5   :  { %v1807_v36 = vadd.f32 %v1806_v1, %v3849_v40  ;;  %2144 = vmatprep.mubr.f32.mxu1 %v1942_v22 }
 0x1f6   :  { %2145 = vmatmul.mubr.f32.gmra.mrb[26].mxu1 %v1941_v60  ;;  %v1943_v8 = vmax.f32 %v1805_v61, 0.0 }
 0x1f7   :  { %v1944_v2 = vmax.f32 %v1807_v36, 0.0  ;;  %v1810_v7 = vpop.f32.mrb[44].mxu0 }
 0x1f8   :  { %v1811_v30 = vadd.f32 %v1810_v7, %v3847_v38  ;;  %v1812_v10 = vpop.f32.mrb[45].mxu0 }
 0x1f9   :  { %v1813_v43 = vadd.f32 %v1812_v10, %v3849_v40  ;;  %2149 = vmatprep.mubr.f32.mxu1 %v1944_v2 }
 0x1fa   :  { %2150 = vmatmul.mubr.f32.gmra.mrb[28].mxu1 %v1943_v8  ;;  %v1945_v15 = vmax.f32 %v1811_v30, 0.0 }
 0x1fb   :  { %v1946_v11 = vmax.f32 %v1813_v43, 0.0  ;;  %v1816_v39 = vpop.f32.mrb[46].mxu0 }
 0x1fc   :  { %v1817_v51 = vadd.f32 %v1816_v39, %v3847_v38  ;;  %v1818_v16 = vpop.f32.mrb[47].mxu0 }
 0x1fd   :  { %v1819_v47 = vadd.f32 %v1818_v16, %v3849_v40  ;;  %2154 = vmatprep.mubr.f32.mxu1 %v1946_v11 }
 0x1fe   :  { %2155 = vmatmul.mubr.f32.gmra.mrb[30].mxu1 %v1945_v15  ;;  %v1947_v19 = vmax.f32 %v1817_v51, 0.0 }
 0x1ff   :  { %v1948_v17 = vmax.f32 %v1819_v47, 0.0  ;;  %v1822_v0 = vpop.f32.mrb[48].mxu0 }
 0x200   :  { %v1823_v20 = vadd.f32 %v1822_v0, %v3847_v38  ;;  %v1824_v12 = vpop.f32.mrb[49].mxu0 }
 0x201   :  { %v1825_v23 = vadd.f32 %v1824_v12, %v3849_v40  ;;  %2159 = vmatprep.mubr.f32.mxu1 %v1948_v17 }
 0x202   :  { %2160 = vmatmul.mubr.f32.gmra.mrb[32].mxu1 %v1947_v19  ;;  %v1949_v25 = vmax.f32 %v1823_v20, 0.0 }
 0x203   :  { %v1950_v24 = vmax.f32 %v1825_v23, 0.0  ;;  %v1828_v34 = vpop.f32.mrb[50].mxu0 }
 0x204   :  { %v1829_v27 = vadd.f32 %v1828_v34, %v3847_v38  ;;  %v1830_v21 = vpop.f32.mrb[51].mxu0 }
 0x205   :  { %v1831_v4 = vadd.f32 %v1830_v21, %v3849_v40  ;;  %2164 = vmatprep.mubr.f32.mxu1 %v1950_v24 }
 0x206   :  { %2165 = vmatmul.mubr.f32.gmra.mrb[34].mxu1 %v1949_v25  ;;  %v1951_v31 = vmax.f32 %v1829_v27, 0.0 }
 0x207   :  { %v1952_v28 = vmax.f32 %v1831_v4, 0.0  ;;  %v1834_v48 = vpop.f32.mrb[52].mxu0 }
 0x208   :  { %v1835_v62 = vadd.f32 %v1834_v48, %v3847_v38  ;;  %v1836_v32 = vpop.f32.mrb[53].mxu0 }
 0x209   :  { %v1837_v54 = vadd.f32 %v1836_v32, %v3849_v40  ;;  %2169 = vmatprep.mubr.f32.mxu1 %v1952_v28 }
 0x20a   :  { %2170 = vmatmul.mubr.f32.gmra.mrb[36].mxu1 %v1951_v31  ;;  %v1953_v37 = vmax.f32 %v1835_v62, 0.0 }
 0x20b   :  { %v1954_v33 = vmax.f32 %v1837_v54, 0.0  ;;  %v1840_v13 = vpop.f32.mrb[54].mxu0 }
 0x20c   :  { %v1841_v3 = vadd.f32 %v1840_v13, %v3847_v38  ;;  %v1842_v35 = vpop.f32.mrb[55].mxu0 }
 0x20d   :  { %v1843_v57 = vadd.f32 %v1842_v35, %v3849_v40  ;;  %2174 = vmatprep.mubr.f32.mxu1 %v1954_v33 }
 0x20e   :  { %2175 = vmatmul.mubr.f32.gmra.mrb[38].mxu1 %v1953_v37  ;;  %v1955_v55 = vmax.f32 %v1841_v3, 0.0 }
 0x20f   :  { %v1956_v63 = vmax.f32 %v1843_v57, 0.0  ;;  %v1846_v58 = vpop.f32.mrb[56].mxu0 }
 0x210   :  { %v1847_v59 = vadd.f32 %v1846_v58, %v3847_v38  ;;  %v1848_v14 = vpop.f32.mrb[57].mxu0 }
 0x211   :  { %v1849_v18 = vadd.f32 %v1848_v14, %v3849_v40  ;;  %2179 = vmatprep.mubr.f32.mxu1 %v1956_v63 }
 0x212   :  { %2180 = vmatmul.mubr.f32.gmra.mrb[40].mxu1 %v1955_v55  ;;  %v1957_v56 = vmax.f32 %v1847_v59, 0.0 }
 0x213   :  { %v1958_v6 = vmax.f32 %v1849_v18, 0.0  ;;  %v1852_v41 = vpop.f32.mrb[58].mxu0 }
 0x214   :  { %v1853_v29 = vadd.f32 %v1852_v41, %v3847_v38  ;;  %v1854_v42 = vpop.f32.mrb[59].mxu0 }
 0x215   :  { %v1855_v5 = vadd.f32 %v1854_v42, %v3849_v40  ;;  %2184 = vmatprep.mubr.f32.mxu1 %v1958_v6 }
 0x216   :  { %2185 = vmatmul.mubr.f32.gmra.mrb[42].mxu1 %v1957_v56  ;;  %v1959_v46 = vmax.f32 %v1853_v29, 0.0 }
 0x217   :  { %v1960_v44 = vmax.f32 %v1855_v5, 0.0  ;;  %v1858_v9 = vpop.f32.mrb[60].mxu0 }
 0x218   :  { %v1859_v26 = vadd.f32 %v1858_v9, %v3847_v38  ;;  %v1860_v49 = vpop.f32.mrb[61].mxu0 }
 0x219   :  { %v1861_v50 = vadd.f32 %v1860_v49, %v3849_v40  ;;  %2189 = vmatprep.mubr.f32.mxu1 %v1960_v44  ;;  %v3918_v44 = vld [vmem:[#allocation17] ss:$0 sm:$0xff]  ;;  %v3924_v49 = vld [vmem:[%s4148_s2] ss:$0 sm:$0xff] }
 0x21a   :  { %2190 = vmatmul.mubr.f32.gmra.mrb[44].mxu1 %v1959_v46  ;;  %v1961_v22 = vmax.f32 %v1859_v26, 0.0 }
 0x21b   :  { %v1962_v45 = vmax.f32 %v1861_v50, 0.0  ;;  %v1864_v52 = vpop.f32.mrb[62].mxu0 }
 0x21c   :  { %v1865_v53 = vadd.f32 %v1864_v52, %v3847_v38  ;;  %v1866_v60 = vpop.f32.mrb[63].mxu0 }
 0x21d   :  { %v1867_v61 = vadd.f32 %v1866_v60, %v3849_v40  ;;  %2194 = vmatprep.mubr.f32.mxu1 %v1962_v45 }
 0x21e   :  { %2195 = vmatmul.mubr.f32.gmra.mrb[46].mxu1 %v1961_v22  ;;  %v1963_v2 = vmax.f32 %v1865_v53, 0.0 }
 0x21f   :  { %v1964_v1 = vmax.f32 %v1867_v61, 0.0  ;;  %v1870_v36 = vpop.f32.mrb[64].mxu0 }
 0x220   :  { %v1871_v7 = vadd.f32 %v1870_v36, %v3847_v38  ;;  %v1872_v8 = vpop.f32.mrb[65].mxu0 }
 0x221   :  { %v1873_v30 = vadd.f32 %v1872_v8, %v3849_v40  ;;  %2199 = vmatprep.mubr.f32.mxu1 %v1964_v1 }
 0x222   :  { %2200 = vmatmul.mubr.f32.gmra.mrb[48].mxu1 %v1963_v2  ;;  %v1965_v11 = vmax.f32 %v1871_v7, 0.0 }
 0x223   :  { %v1966_v10 = vmax.f32 %v1873_v30, 0.0  ;;  %v1876_v43 = vpop.f32.mrb[66].mxu0 }
 0x224   :  { %v1877_v39 = vadd.f32 %v1876_v43, %v3847_v38  ;;  %v1878_v15 = vpop.f32.mrb[67].mxu0 }
 0x225   :  { %v1879_v51 = vadd.f32 %v1878_v15, %v3849_v40  ;;  %2204 = vmatprep.mubr.f32.mxu1 %v1966_v10 }
 0x226   :  { %2205 = vmatmul.mubr.f32.gmra.mrb[50].mxu1 %v1965_v11  ;;  %v1967_v17 = vmax.f32 %v1877_v39, 0.0 }
 0x227   :  { %v1968_v16 = vmax.f32 %v1879_v51, 0.0  ;;  %v1882_v47 = vpop.f32.mrb[68].mxu0 }
 0x228   :  { %v1883_v0 = vadd.f32 %v1882_v47, %v3847_v38  ;;  %v1884_v19 = vpop.f32.mrb[69].mxu0 }
 0x229   :  { %v1885_v20 = vadd.f32 %v1884_v19, %v3849_v40  ;;  %2209 = vmatprep.mubr.f32.mxu1 %v1968_v16 }
 0x22a   :  { %2210 = vmatmul.mubr.f32.gmra.mrb[52].mxu1 %v1967_v17  ;;  %v1969_v24 = vmax.f32 %v1883_v0, 0.0 }
 0x22b   :  { %v1970_v12 = vmax.f32 %v1885_v20, 0.0  ;;  %v1888_v23 = vpop.f32.mrb[70].mxu0 }
 0x22c   :  { %v1889_v34 = vadd.f32 %v1888_v23, %v3847_v38  ;;  %v1890_v25 = vpop.f32.mrb[71].mxu0 }
 0x22d   :  { %v1891_v27 = vadd.f32 %v1890_v25, %v3849_v40  ;;  %2214 = vmatprep.mubr.f32.mxu1 %v1970_v12 }
 0x22e   :  { %2215 = vmatmul.mubr.f32.gmra.mrb[54].mxu1 %v1969_v24  ;;  %v1971_v28 = vmax.f32 %v1889_v34, 0.0 }
 0x22f   :  { %v1972_v21 = vmax.f32 %v1891_v27, 0.0  ;;  %v1894_v4 = vpop.f32.mrb[72].mxu0 }
 0x230   :  { %v1895_v48 = vadd.f32 %v1894_v4, %v3847_v38  ;;  %v1896_v31 = vpop.f32.mrb[73].mxu0 }
 0x231   :  { %v1897_v62 = vadd.f32 %v1896_v31, %v3849_v40  ;;  %2219 = vmatprep.mubr.f32.mxu1 %v1972_v21 }
 0x232   :  { %2220 = vmatmul.mubr.f32.gmra.mrb[56].mxu1 %v1971_v28  ;;  %v1973_v33 = vmax.f32 %v1895_v48, 0.0 }
 0x233   :  { %v1974_v32 = vmax.f32 %v1897_v62, 0.0  ;;  %v1900_v54 = vpop.f32.mrb[74].mxu0 }
 0x234   :  { %v1901_v13 = vadd.f32 %v1900_v54, %v3847_v38  ;;  %v1902_v37 = vpop.f32.mrb[75].mxu0 }
 0x235   :  { %v1903_v3 = vadd.f32 %v1902_v37, %v3849_v40  ;;  %2224 = vmatprep.mubr.f32.mxu1 %v1974_v32 }
 0x236   :  { %2225 = vmatmul.mubr.f32.gmra.mrb[58].mxu1 %v1973_v33  ;;  %v1975_v63 = vmax.f32 %v1901_v13, 0.0 }
 0x237   :  { %v1976_v35 = vmax.f32 %v1903_v3, 0.0  ;;  %v1906_v57 = vpop.f32.mrb[76].mxu0 }
 0x238   :  { %v1907_v58 = vadd.f32 %v1906_v57, %v3847_v38  ;;  %v1908_v55 = vpop.f32.mrb[77].mxu0 }
 0x239   :  { %v1909_v59 = vadd.f32 %v1908_v55, %v3849_v40  ;;  %2229 = vmatprep.mubr.f32.mxu1 %v1976_v35 }
 0x23a   :  { %2230 = vmatmul.mubr.f32.gmra.mrb[60].mxu1 %v1975_v63  ;;  %v1977_v6 = vmax.f32 %v1907_v58, 0.0 }
 0x23b   :  { %v1978_v14 = vmax.f32 %v1909_v59, 0.0  ;;  %v1912_v18 = vpop.f32.mrb[78].mxu0 }
 0x23c   :  { %v1913_v41 = vadd.f32 %v1912_v18, %v3847_v38  ;;  %v1914_v56 = vpop.f32.mrb[79].mxu0 }
 0x23d   :  { %v1915_v29 = vadd.f32 %v1914_v56, %v3849_v40  ;;  %2234 = vmatprep.mubr.f32.mxu1 %v1978_v14 }
 0x23e   :  { %2235 = vmatmul.mubr.f32.gmra.mrb[62].mxu1 %v1977_v6  ;;  %v1979_v5 = vmax.f32 %v1913_v41, 0.0 }
 0x23f   :  { %v1980_v42 = vmax.f32 %v1915_v29, 0.0 }
 0x241   :  { %2239 = vmatprep.mubr.f32.mxu1 %v1980_v42 }
 0x242   :  { %2240 = vmatmul.mubr.f32.gmra.mrb[64].mxu1 %v1979_v5 }
 0x299   :  { %v2086_v9 = vpop.f32.mrb[80].mxu0 }
 0x29a   :  { %v2087_v46 = vadd.f32 %v3918_v44, %v2086_v9  ;;  %v2088_v26 = vpop.f32.mrb[81].mxu0 }
 0x29c   :  { %v2245_v38 = vmax.f32 %v2087_v46, 0.0 }
 0x29d   :  { %v2091_v50 = vpop.f32.mrb[82].mxu0 }
 0x29e   :  { %v2092_v40 = vadd.f32 %v3918_v44, %v2091_v50  ;;  %v2093_v45 = vpop.f32.mrb[83].mxu0  ;;  %v2284_v52 = vmul.f32 %v3924_v49, %v2245_v38 }
 0x2a0   :  { %v2246_v22 = vmax.f32 %v2092_v40, 0.0  ;;  %v2317_v53 = vsel %vm2316_vm4, %v2284_v52, 0.0 }
 0x2a1   :  { %v2096_v60 = vpop.f32.mrb[84].mxu0  ;;  %2318 = vadd.xlane.f32.xlu0 %v2317_v53 }
 0x2a2   :  { %v2097_v61 = vadd.f32 %v3918_v44, %v2096_v60  ;;  %v2098_v1 = vpop.f32.mrb[85].mxu0  ;;  %v2285_v36 = vmul.f32 %v3924_v49, %v2246_v22 }
 0x2a4   :  { %v2247_v2 = vmax.f32 %v2097_v61, 0.0  ;;  %v2320_v7 = vsel %vm2316_vm4, %v2285_v36, 0.0 }
 0x2a5   :  { %v2101_v8 = vpop.f32.mrb[86].mxu0  ;;  %2321 = vadd.xlane.f32.xlu1 %v2320_v7 }
 0x2a6   :  { %v2102_v30 = vadd.f32 %v3918_v44, %v2101_v8  ;;  %v2103_v10 = vpop.f32.mrb[87].mxu0  ;;  %v2286_v43 = vmul.f32 %v3924_v49, %v2247_v2 }
 0x2a8   :  { %v2248_v11 = vmax.f32 %v2102_v30, 0.0  ;;  %v2323_v39 = vsel %vm2316_vm4, %v2286_v43, 0.0 }
 0x2a9   :  { %v2106_v15 = vpop.f32.mrb[88].mxu0  ;;  %2324 = vadd.xlane.f32.xlu0 %v2323_v39 }
 0x2aa   :  { %v2107_v51 = vadd.f32 %v3918_v44, %v2106_v15  ;;  %v2108_v16 = vpop.f32.mrb[89].mxu0  ;;  %v2287_v47 = vmul.f32 %v3924_v49, %v2248_v11 }
 0x2ac   :  { %v2249_v17 = vmax.f32 %v2107_v51, 0.0  ;;  %v2326_v0 = vsel %vm2316_vm4, %v2287_v47, 0.0 }
 0x2ad   :  { %v2111_v19 = vpop.f32.mrb[90].mxu0  ;;  %2327 = vadd.xlane.f32.xlu0 %v2326_v0 }
 0x2ae   :  { %v2112_v20 = vadd.f32 %v3918_v44, %v2111_v19  ;;  %v2113_v12 = vpop.f32.mrb[91].mxu0  ;;  %v2288_v23 = vmul.f32 %v3924_v49, %v2249_v17 }
 0x2b0   :  { %v2250_v24 = vmax.f32 %v2112_v20, 0.0  ;;  %v2329_v34 = vsel %vm2316_vm4, %v2288_v23, 0.0 }
 0x2b1   :  { %v2116_v25 = vpop.f32.mrb[92].mxu0  ;;  %2330 = vadd.xlane.f32.xlu1 %v2329_v34 }
 0x2b2   :  { %v2117_v27 = vadd.f32 %v3918_v44, %v2116_v25  ;;  %v2118_v21 = vpop.f32.mrb[93].mxu0  ;;  %v2289_v4 = vmul.f32 %v3924_v49, %v2250_v24 }
 0x2b4   :  { %v2251_v28 = vmax.f32 %v2117_v27, 0.0  ;;  %v2332_v48 = vsel %vm2316_vm4, %v2289_v4, 0.0 }
 0x2b5   :  { %v2121_v31 = vpop.f32.mrb[16].mxu1  ;;  %2333 = vadd.xlane.f32.xlu0 %v2332_v48 }
 0x2b6   :  { %v2122_v62 = vadd.f32 %v3918_v44, %v2121_v31  ;;  %v2123_v32 = vpop.f32.mrb[17].mxu1  ;;  %v2290_v54 = vmul.f32 %v3924_v49, %v2251_v28 }
 0x2b8   :  { %v2252_v33 = vmax.f32 %v2122_v62, 0.0  ;;  %v2335_v13 = vsel %vm2316_vm4, %v2290_v54, 0.0 }
 0x2b9   :  { %v2126_v37 = vpop.f32.mrb[18].mxu1  ;;  %2336 = vadd.xlane.f32.xlu1 %v2335_v13 }
 0x2ba   :  { %v2127_v3 = vadd.f32 %v3918_v44, %v2126_v37  ;;  %v2128_v35 = vpop.f32.mrb[19].mxu1  ;;  %v2291_v57 = vmul.f32 %v3924_v49, %v2252_v33 }
 0x2bc   :  { %v2253_v63 = vmax.f32 %v2127_v3, 0.0  ;;  %v2338_v58 = vsel %vm2316_vm4, %v2291_v57, 0.0 }
 0x2bd   :  { %v2131_v55 = vpop.f32.mrb[20].mxu1  ;;  %2339 = vadd.xlane.f32.xlu0 %v2338_v58 }
 0x2be   :  { %v2132_v59 = vadd.f32 %v3918_v44, %v2131_v55  ;;  %v2133_v14 = vpop.f32.mrb[21].mxu1  ;;  %v2292_v18 = vmul.f32 %v3924_v49, %v2253_v63 }
 0x2c0   :  { %v2254_v6 = vmax.f32 %v2132_v59, 0.0  ;;  %v2341_v41 = vsel %vm2316_vm4, %v2292_v18, 0.0 }
 0x2c1   :  { %v2136_v56 = vpop.f32.mrb[22].mxu1  ;;  %2342 = vadd.xlane.f32.xlu1 %v2341_v41 }
 0x2c2   :  { %v2137_v29 = vadd.f32 %v3918_v44, %v2136_v56  ;;  %v2138_v42 = vpop.f32.mrb[23].mxu1  ;;  %v2293_v5 = vmul.f32 %v3924_v49, %v2254_v6 }
 0x2c4   :  { %v2255_v9 = vmax.f32 %v2137_v29, 0.0  ;;  %v2344_v46 = vsel %vm2316_vm4, %v2293_v5, 0.0 }
 0x2c5   :  { %v2141_v26 = vpop.f32.mrb[24].mxu1  ;;  %2345 = vadd.xlane.f32.xlu0 %v2344_v46 }
 0x2c6   :  { %v2142_v38 = vadd.f32 %v3918_v44, %v2141_v26  ;;  %v2143_v50 = vpop.f32.mrb[25].mxu1  ;;  %v2294_v40 = vmul.f32 %v3924_v49, %v2255_v9 }
 0x2c8   :  { %v2256_v45 = vmax.f32 %v2142_v38, 0.0  ;;  %v2347_v52 = vsel %vm2316_vm4, %v2294_v40, 0.0 }
 0x2c9   :  { %v2146_v22 = vpop.f32.mrb[26].mxu1  ;;  %2348 = vadd.xlane.f32.xlu1 %v2347_v52 }
 0x2ca   :  { %v2147_v53 = vadd.f32 %v3918_v44, %v2146_v22  ;;  %v2148_v60 = vpop.f32.mrb[27].mxu1  ;;  %v2295_v61 = vmul.f32 %v3924_v49, %v2256_v45 }
 0x2cc   :  { %v2257_v1 = vmax.f32 %v2147_v53, 0.0  ;;  %v2350_v36 = vsel %vm2316_vm4, %v2295_v61, 0.0 }
 0x2cd   :  { %v2151_v2 = vpop.f32.mrb[28].mxu1  ;;  %2351 = vadd.xlane.f32.xlu0 %v2350_v36 }
 0x2ce   :  { %v2152_v7 = vadd.f32 %v3918_v44, %v2151_v2  ;;  %v2153_v8 = vpop.f32.mrb[29].mxu1  ;;  %v2296_v30 = vmul.f32 %v3924_v49, %v2257_v1 }
 0x2d0   :  { %v2258_v10 = vmax.f32 %v2152_v7, 0.0  ;;  %v2353_v43 = vsel %vm2316_vm4, %v2296_v30, 0.0 }
 0x2d1   :  { %v2156_v11 = vpop.f32.mrb[30].mxu1  ;;  %2354 = vadd.xlane.f32.xlu1 %v2353_v43 }
 0x2d2   :  { %v2157_v39 = vadd.f32 %v3918_v44, %v2156_v11  ;;  %v2158_v15 = vpop.f32.mrb[31].mxu1  ;;  %v2297_v51 = vmul.f32 %v3924_v49, %v2258_v10 }
 0x2d4   :  { %v2259_v16 = vmax.f32 %v2157_v39, 0.0  ;;  %v2356_v47 = vsel %vm2316_vm4, %v2297_v51, 0.0 }
 0x2d5   :  { %v2161_v17 = vpop.f32.mrb[32].mxu1  ;;  %2357 = vadd.xlane.f32.xlu0 %v2356_v47 }
 0x2d6   :  { %v2162_v0 = vadd.f32 %v3918_v44, %v2161_v17  ;;  %v2163_v19 = vpop.f32.mrb[33].mxu1  ;;  %v2298_v20 = vmul.f32 %v3924_v49, %v2259_v16 }
 0x2d8   :  { %v2260_v12 = vmax.f32 %v2162_v0, 0.0  ;;  %v2359_v23 = vsel %vm2316_vm4, %v2298_v20, 0.0 }
 0x2d9   :  { %v2166_v24 = vpop.f32.mrb[34].mxu1  ;;  %2360 = vadd.xlane.f32.xlu1 %v2359_v23 }
 0x2da   :  { %v2167_v34 = vadd.f32 %v3918_v44, %v2166_v24  ;;  %v2168_v25 = vpop.f32.mrb[35].mxu1  ;;  %v2299_v27 = vmul.f32 %v3924_v49, %v2260_v12 }
 0x2dc   :  { %v2261_v21 = vmax.f32 %v2167_v34, 0.0  ;;  %v2362_v4 = vsel %vm2316_vm4, %v2299_v27, 0.0 }
 0x2dd   :  { %v2171_v28 = vpop.f32.mrb[36].mxu1  ;;  %2363 = vadd.xlane.f32.xlu0 %v2362_v4 }
 0x2de   :  { %v2172_v48 = vadd.f32 %v3918_v44, %v2171_v28  ;;  %v2173_v31 = vpop.f32.mrb[37].mxu1  ;;  %v2300_v62 = vmul.f32 %v3924_v49, %v2261_v21 }
 0x2e0   :  { %v2262_v32 = vmax.f32 %v2172_v48, 0.0  ;;  %v2365_v54 = vsel %vm2316_vm4, %v2300_v62, 0.0 }
 0x2e1   :  { %v2176_v33 = vpop.f32.mrb[38].mxu1  ;;  %2366 = vadd.xlane.f32.xlu1 %v2365_v54 }
 0x2e2   :  { %v2177_v13 = vadd.f32 %v3918_v44, %v2176_v33  ;;  %v2178_v37 = vpop.f32.mrb[39].mxu1  ;;  %v2301_v3 = vmul.f32 %v3924_v49, %v2262_v32 }
 0x2e4   :  { %v2263_v35 = vmax.f32 %v2177_v13, 0.0  ;;  %v2368_v57 = vsel %vm2316_vm4, %v2301_v3, 0.0 }
 0x2e5   :  { %v2181_v63 = vpop.f32.mrb[40].mxu1  ;;  %2369 = vadd.xlane.f32.xlu0 %v2368_v57 }
 0x2e6   :  { %v2182_v58 = vadd.f32 %v3918_v44, %v2181_v63  ;;  %v2183_v55 = vpop.f32.mrb[41].mxu1  ;;  %v2302_v59 = vmul.f32 %v3924_v49, %v2263_v35 }
 0x2e8   :  { %v2264_v14 = vmax.f32 %v2182_v58, 0.0  ;;  %v2371_v18 = vsel %vm2316_vm4, %v2302_v59, 0.0 }
 0x2e9   :  { %v2186_v6 = vpop.f32.mrb[42].mxu1  ;;  %2372 = vadd.xlane.f32.xlu1 %v2371_v18 }
 0x2ea   :  { %v2187_v41 = vadd.f32 %v3918_v44, %v2186_v6  ;;  %v2188_v56 = vpop.f32.mrb[43].mxu1  ;;  %v2303_v29 = vmul.f32 %v3924_v49, %v2264_v14 }
 0x2ec   :  { %v2265_v42 = vmax.f32 %v2187_v41, 0.0  ;;  %v2374_v5 = vsel %vm2316_vm4, %v2303_v29, 0.0 }
 0x2ed   :  { %v2191_v9 = vpop.f32.mrb[44].mxu1  ;;  %2375 = vadd.xlane.f32.xlu0 %v2374_v5 }
 0x2ee   :  { %v2192_v46 = vadd.f32 %v3918_v44, %v2191_v9  ;;  %v2193_v26 = vpop.f32.mrb[45].mxu1  ;;  %v2304_v38 = vmul.f32 %v3924_v49, %v2265_v42 }
 0x2f0   :  { %v2266_v50 = vmax.f32 %v2192_v46, 0.0  ;;  %v2377_v40 = vsel %vm2316_vm4, %v2304_v38, 0.0 }
 0x2f1   :  { %v2196_v45 = vpop.f32.mrb[46].mxu1  ;;  %2378 = vadd.xlane.f32.xlu1 %v2377_v40 }
 0x2f2   :  { %v2197_v52 = vadd.f32 %v3918_v44, %v2196_v45  ;;  %v2198_v22 = vpop.f32.mrb[47].mxu1  ;;  %v2305_v53 = vmul.f32 %v3924_v49, %v2266_v50 }
 0x2f4   :  { %v2267_v60 = vmax.f32 %v2197_v52, 0.0  ;;  %v2380_v61 = vsel %vm2316_vm4, %v2305_v53, 0.0 }
 0x2f5   :  { %v2201_v1 = vpop.f32.mrb[48].mxu1  ;;  %2381 = vadd.xlane.f32.xlu0 %v2380_v61 }
 0x2f6   :  { %v2202_v36 = vadd.f32 %v3918_v44, %v2201_v1  ;;  %v2203_v2 = vpop.f32.mrb[49].mxu1  ;;  %v2306_v7 = vmul.f32 %v3924_v49, %v2267_v60 }
 0x2f8   :  { %v2268_v8 = vmax.f32 %v2202_v36, 0.0  ;;  %v2383_v30 = vsel %vm2316_vm4, %v2306_v7, 0.0 }
 0x2f9   :  { %v2206_v10 = vpop.f32.mrb[50].mxu1  ;;  %2384 = vadd.xlane.f32.xlu1 %v2383_v30 }
 0x2fa   :  { %v2207_v43 = vadd.f32 %v3918_v44, %v2206_v10  ;;  %v2208_v11 = vpop.f32.mrb[51].mxu1  ;;  %v2307_v39 = vmul.f32 %v3924_v49, %v2268_v8 }
 0x2fc   :  { %v2269_v15 = vmax.f32 %v2207_v43, 0.0  ;;  %v2386_v51 = vsel %vm2316_vm4, %v2307_v39, 0.0  ;;  %v4037_v43 = vld [vmem:[#allocation12] ss:$0 sm:$0xff] }
 0x2fd   :  { %v2211_v16 = vpop.f32.mrb[52].mxu1  ;;  %2387 = vadd.xlane.f32.xlu0 %v2386_v51 }
 0x2fe   :  { %v2212_v47 = vadd.f32 %v3918_v44, %v2211_v16  ;;  %v2213_v17 = vpop.f32.mrb[53].mxu1  ;;  %v2308_v0 = vmul.f32 %v3924_v49, %v2269_v15 }
 0x300   :  { %v2270_v19 = vmax.f32 %v2212_v47, 0.0  ;;  %v2389_v20 = vsel %vm2316_vm4, %v2308_v0, 0.0 }
 0x301   :  { %v2216_v12 = vpop.f32.mrb[54].mxu1  ;;  %2390 = vadd.xlane.f32.xlu1 %v2389_v20 }
 0x302   :  { %v2217_v23 = vadd.f32 %v3918_v44, %v2216_v12  ;;  %v2218_v24 = vpop.f32.mrb[55].mxu1  ;;  %v2309_v34 = vmul.f32 %v3924_v49, %v2270_v19 }
 0x304   :  { %v2271_v25 = vmax.f32 %v2217_v23, 0.0  ;;  %v2392_v27 = vsel %vm2316_vm4, %v2309_v34, 0.0 }
 0x305   :  { %v2221_v21 = vpop.f32.mrb[56].mxu1  ;;  %2393 = vadd.xlane.f32.xlu0 %v2392_v27 }
 0x306   :  { %v2222_v4 = vadd.f32 %v3918_v44, %v2221_v21  ;;  %v2223_v28 = vpop.f32.mrb[57].mxu1  ;;  %v2310_v48 = vmul.f32 %v3924_v49, %v2271_v25 }
 0x308   :  { %v2272_v31 = vmax.f32 %v2222_v4, 0.0  ;;  %v2395_v62 = vsel %vm2316_vm4, %v2310_v48, 0.0 }
 0x309   :  { %v2226_v32 = vpop.f32.mrb[58].mxu1  ;;  %2396 = vadd.xlane.f32.xlu1 %v2395_v62 }
 0x30a   :  { %v2227_v54 = vadd.f32 %v3918_v44, %v2226_v32  ;;  %v2228_v33 = vpop.f32.mrb[59].mxu1  ;;  %v2311_v13 = vmul.f32 %v3924_v49, %v2272_v31 }
 0x30c   :  { %v2273_v37 = vmax.f32 %v2227_v54, 0.0  ;;  %v2398_v3 = vsel %vm2316_vm4, %v2311_v13, 0.0 }
 0x30d   :  { %v2231_v35 = vpop.f32.mrb[60].mxu1  ;;  %2399 = vadd.xlane.f32.xlu0 %v2398_v3 }
 0x30e   :  { %v2232_v57 = vadd.f32 %v3918_v44, %v2231_v35  ;;  %v2233_v63 = vpop.f32.mrb[61].mxu1  ;;  %v2312_v58 = vmul.f32 %v3924_v49, %v2273_v37 }
 0x310   :  { %v2274_v55 = vmax.f32 %v2232_v57, 0.0  ;;  %v2401_v59 = vsel %vm2316_vm4, %v2312_v58, 0.0 }
 0x311   :  { %v2236_v14 = vpop.f32.mrb[62].mxu1  ;;  %2402 = vadd.xlane.f32.xlu1 %v2401_v59 }
 0x312   :  { %v2237_v18 = vadd.f32 %v3918_v44, %v2236_v14  ;;  %v2238_v6 = vpop.f32.mrb[63].mxu1  ;;  %v2313_v41 = vmul.f32 %v3924_v49, %v2274_v55 }
 0x314   :  { %v2275_v56 = vmax.f32 %v2237_v18, 0.0  ;;  %v2404_v29 = vsel %vm2316_vm4, %v2313_v41, 0.0 }
 0x315   :  { %v2241_v42 = vpop.f32.mrb[64].mxu1  ;;  %2405 = vadd.xlane.f32.xlu0 %v2404_v29 }
 0x316   :  { %v2242_v5 = vadd.f32 %v3918_v44, %v2241_v42  ;;  %v2243_v9 = vpop.f32.mrb[65].mxu1  ;;  %v2314_v46 = vmul.f32 %v3924_v49, %v2275_v56 }
 0x318   :  { %v2276_v26 = vmax.f32 %v2242_v5, 0.0  ;;  %v2407_v38 = vsel %vm2316_vm4, %v2314_v46, 0.0 }
 0x319   :  { %2408 = vadd.xlane.f32.xlu1 %v2407_v38 }
 0x31a   :  { %v2315_v50 = vmul.f32 %v3924_v49, %v2276_v26 }
 0x31c   :  { %v2410_v40 = vsel %vm2316_vm4, %v2315_v50, 0.0 }
 0x31d   :  { %2411 = vadd.xlane.f32.xlu0 %v2410_v40 }
 0x32e   :  { %v2319_v45 = vpop.xlane.xlu0 %2318 }
 0x32f   :  { %v2420_v15 = vadd.f32 %v4037_v43, %v2319_v45 }
 0x332   :  { %v2322_v22 = vpop.xlane.xlu1 %2321 }
 0x333   :  { %v2421_v17 = vadd.f32 %v4037_v43, %v2322_v22 }
 0x336   :  { %v2325_v52 = vpop.xlane.xlu0 %2324 }
 0x337   :  { %v2422_v24 = vadd.f32 %v4037_v43, %v2325_v52 }
 0x33a   :  { %v2328_v53 = vpop.xlane.xlu0 %2327 }
 0x33b   :  { %v2423_v28 = vadd.f32 %v4037_v43, %v2328_v53 }
 0x33e   :  { %v2331_v60 = vpop.xlane.xlu1 %2330 }
 0x33f   :  { %v2424_v33 = vadd.f32 %v4037_v43, %v2331_v60 }
 0x342   :  { %v2334_v61 = vpop.xlane.xlu0 %2333 }
 0x343   :  { %v2425_v55 = vadd.f32 %v4037_v43, %v2334_v61 }
 0x346   :  { %v2337_v1 = vpop.xlane.xlu1 %2336 }
 0x347   :  { %v2426_v42 = vadd.f32 %v4037_v43, %v2337_v1 }
 0x34a   :  { %v4021_v44 = vpop.xlane.xlu0 %2339 }
 0x34b   :  { %v2427_v45 = vadd.f32 %v4037_v43, %v4021_v44 }
 0x34e   :  { %v4023_v36 = vpop.xlane.xlu1 %2342 }
 0x352   :  { %v4025_v2 = vpop.xlane.xlu0 %2345 }
 0x356   :  { %v4027_v7 = vpop.xlane.xlu1 %2348 }
 0x35a   :  { %v4029_v8 = vpop.xlane.xlu0 %2351 }
 0x35e   :  { %v4031_v49 = vpop.xlane.xlu1 %2354 }
 0x362   :  { %v4033_v30 = vpop.xlane.xlu0 %2357 }
 0x366   :  { %v4035_v10 = vpop.xlane.xlu1 %2360 }
 0x36a   :  { %v4039_v11 = vpop.xlane.xlu0 %2363 }
 0x36e   :  { %v2367_v39 = vpop.xlane.xlu1 %2366 }
 0x36f   :  { %v2436_v51 = vadd.f32 %v4037_v43, %v2367_v39 }
 0x371   :  { %v2452_v16 = vmul.f32 %v2436_v51, %v2420_v15  ;;  %v2428_v51 = vadd.f32 %v4037_v43, %v4023_v36 }
 0x372   :  { %v2370_v47 = vpop.xlane.xlu0 %2369 }
 0x373   :  { %v2468_v0 = vsub.f32 0.0, %v2452_v16  ;;  %v2437_v19 = vadd.f32 %v4037_v43, %v2370_v47 }
 0x375   :  { %v2484_v20 = vmul.f32 1.442695, %v2468_v0  ;;  %v2453_v12 = vmul.f32 %v2437_v19, %v2421_v17 }
 0x376   :  { %v2373_v23 = vpop.xlane.xlu1 %2372 }
 0x377   :  { %3041 = vpow2.f32 %v2484_v20  ;;  %v2469_v34 = vsub.f32 0.0, %v2453_v12  ;;  %v2438_v25 = vadd.f32 %v4037_v43, %v2373_v23  ;;  %v2429_v23 = vadd.f32 %v4037_v43, %v4025_v2 }
 0x379   :  { %v2486_v27 = vmul.f32 1.442695, %v2469_v34  ;;  %v2454_v21 = vmul.f32 %v2438_v25, %v2422_v24 }
 0x37a   :  { %v2376_v4 = vpop.xlane.xlu0 %2375 }
 0x37b   :  { %3043 = vpow2.f32 %v2486_v27  ;;  %v2470_v48 = vsub.f32 0.0, %v2454_v21  ;;  %v2439_v31 = vadd.f32 %v4037_v43, %v2376_v4 }
 0x37d   :  { %v2488_v62 = vmul.f32 1.442695, %v2470_v48  ;;  %v2455_v32 = vmul.f32 %v2439_v31, %v2423_v28  ;;  %v2430_v48 = vadd.f32 %v4037_v43, %v4027_v7 }
 0x37e   :  { %v2379_v54 = vpop.xlane.xlu1 %2378 }
 0x37f   :  { %3045 = vpow2.f32 %v2488_v62  ;;  %v2471_v13 = vsub.f32 0.0, %v2455_v32  ;;  %v2440_v37 = vadd.f32 %v4037_v43, %v2379_v54 }
 0x381   :  { %v3042_v3 = vpop.eup %3041  ;;  %v2490_v35 = vmul.f32 1.442695, %v2471_v13  ;;  %v2456_v57 = vmul.f32 %v2440_v37, %v2424_v33 }
 0x382   :  { %v2516_v63 = vadd.f32 1.0, %v3042_v3  ;;  %v2382_v58 = vpop.xlane.xlu0 %2381  ;;  %v2431_v3 = vadd.f32 %v4037_v43, %v4029_v8 }
 0x383   :  { %3047 = vpow2.f32 %v2490_v35  ;;  %v2472_v59 = vsub.f32 0.0, %v2456_v57  ;;  %v2441_v14 = vadd.f32 %v4037_v43, %v2382_v58 }
 0x384   :  { %3049 = vrcp.f32 %v2516_v63 }
 0x385   :  { %v3044_v18 = vpop.eup %3043  ;;  %v2492_v6 = vmul.f32 1.442695, %v2472_v59  ;;  %v2457_v41 = vmul.f32 %v2441_v14, %v2425_v55 }
 0x386   :  { %v2517_v56 = vadd.f32 1.0, %v3044_v18  ;;  %v2385_v29 = vpop.xlane.xlu1 %2384  ;;  %v2432_v18 = vadd.f32 %v4037_v43, %v4031_v49 }
 0x387   :  { %3051 = vpow2.f32 %v2492_v6  ;;  %v2473_v5 = vsub.f32 0.0, %v2457_v41  ;;  %v2442_v9 = vadd.f32 %v4037_v43, %v2385_v29 }
 0x388   :  { %3053 = vrcp.f32 %v2517_v56 }
 0x389   :  { %v3046_v46 = vpop.eup %3045  ;;  %v2494_v26 = vmul.f32 1.442695, %v2473_v5  ;;  %v2458_v38 = vmul.f32 %v2442_v9, %v2426_v42 }
 0x38a   :  { %v2518_v50 = vadd.f32 1.0, %v3046_v46  ;;  %v2388_v40 = vpop.xlane.xlu0 %2387  ;;  %v2433_v46 = vadd.f32 %v4037_v43, %v4033_v30 }
 0x38b   :  { %3055 = vpow2.f32 %v2494_v26  ;;  %v2474_v52 = vsub.f32 0.0, %v2458_v38  ;;  %v2443_v22 = vadd.f32 %v4037_v43, %v2388_v40 }
 0x38c   :  { %3057 = vrcp.f32 %v2518_v50 }
 0x38d   :  { %v3048_v53 = vpop.eup %3047  ;;  %v2496_v60 = vmul.f32 1.442695, %v2474_v52  ;;  %v2459_v61 = vmul.f32 %v2443_v22, %v2427_v45 }
 0x38e   :  { %v3050_v1 = vpop.eup %3049  ;;  %v2519_v39 = vadd.f32 1.0, %v3048_v53  ;;  %v2391_v15 = vpop.xlane.xlu1 %2390  ;;  %v2434_v53 = vadd.f32 %v4037_v43, %v4035_v10 }
 0x38f   :  { %2549 = vst.msk [vmem:[%s4156_s10] sm:$0xff] %vm2548_vm5, %v3050_v1  ;;  %3059 = vpow2.f32 %v2496_v60  ;;  %v2475_v44 = vsub.f32 0.0, %v2459_v61  ;;  %v2444_v16 = vadd.f32 %v4037_v43, %v2391_v15 }
 0x390   :  { %3061 = vrcp.f32 %v2519_v39 }
 0x391   :  { %v3052_v47 = vpop.eup %3051  ;;  %v2498_v17 = vmul.f32 1.442695, %v2475_v44  ;;  %v2460_v0 = vmul.f32 %v2444_v16, %v2428_v51  ;;  %v2435_v16 = vadd.f32 %v4037_v43, %v4039_v11 }
 0x392   :  { %v3054_v19 = vpop.eup %3053  ;;  %v2520_v20 = vadd.f32 1.0, %v3052_v47  ;;  %v2394_v12 = vpop.xlane.xlu0 %2393 }
 0x393   :  { %2550 = vst.msk [vmem:[%s4156_s10 + $0x8] sm:$0xff] %vm2548_vm5, %v3054_v19  ;;  %3063 = vpow2.f32 %v2498_v17  ;;  %v2476_v36 = vsub.f32 0.0, %v2460_v0  ;;  %v2445_v24 = vadd.f32 %v4037_v43, %v2394_v12 }
 0x394   :  { %3065 = vrcp.f32 %v2520_v20 }
 0x395   :  { %v3056_v34 = vpop.eup %3055  ;;  %v2500_v25 = vmul.f32 1.442695, %v2476_v36  ;;  %v2461_v27 = vmul.f32 %v2445_v24, %v2429_v23 }
 0x396   :  { %v3058_v21 = vpop.eup %3057  ;;  %v2521_v4 = vadd.f32 1.0, %v3056_v34  ;;  %v2397_v28 = vpop.xlane.xlu1 %2396 }
 0x397   :  { %2551 = vst.msk [vmem:[%s4156_s10 + $0x10] sm:$0xff] %vm2548_vm5, %v3058_v21  ;;  %3067 = vpow2.f32 %v2500_v25  ;;  %v2477_v2 = vsub.f32 0.0, %v2461_v27  ;;  %v2446_v31 = vadd.f32 %v4037_v43, %v2397_v28 }
 0x398   :  { %3069 = vrcp.f32 %v2521_v4 }
 0x399   :  { %v3060_v62 = vpop.eup %3059  ;;  %v2502_v32 = vmul.f32 1.442695, %v2477_v2  ;;  %v2462_v54 = vmul.f32 %v2446_v31, %v2430_v48 }
 0x39a   :  { %v3062_v33 = vpop.eup %3061  ;;  %v2522_v13 = vadd.f32 1.0, %v3060_v62  ;;  %v2400_v37 = vpop.xlane.xlu0 %2399 }
 0x39b   :  { %2552 = vst.msk [vmem:[%s4156_s10 + $0x18] sm:$0xff] %vm2548_vm5, %v3062_v33  ;;  %3071 = vpow2.f32 %v2502_v32  ;;  %v2478_v7 = vsub.f32 0.0, %v2462_v54  ;;  %v2447_v35 = vadd.f32 %v4037_v43, %v2400_v37 }
 0x39c   :  { %3073 = vrcp.f32 %v2522_v13 }
 0x39d   :  { %v3064_v57 = vpop.eup %3063  ;;  %v2504_v63 = vmul.f32 1.442695, %v2478_v7  ;;  %v2463_v58 = vmul.f32 %v2447_v35, %v2431_v3 }
 0x39e   :  { %v3066_v55 = vpop.eup %3065  ;;  %v2523_v59 = vadd.f32 1.0, %v3064_v57  ;;  %v2403_v14 = vpop.xlane.xlu1 %2402 }
 0x39f   :  { %2553 = vst.msk [vmem:[%s4156_s10 + $0x20] sm:$0xff] %vm2548_vm5, %v3066_v55  ;;  %3075 = vpow2.f32 %v2504_v63  ;;  %v2479_v8 = vsub.f32 0.0, %v2463_v58  ;;  %v2448_v6 = vadd.f32 %v4037_v43, %v2403_v14 }
 0x3a0   :  { %3077 = vrcp.f32 %v2523_v59 }
 0x3a1   :  { %v3068_v41 = vpop.eup %3067  ;;  %v2506_v56 = vmul.f32 1.442695, %v2479_v8  ;;  %v2464_v29 = vmul.f32 %v2448_v6, %v2432_v18 }
 0x3a2   :  { %v3070_v42 = vpop.eup %3069  ;;  %v2524_v5 = vadd.f32 1.0, %v3068_v41  ;;  %v2406_v9 = vpop.xlane.xlu0 %2405 }
 0x3a3   :  { %2554 = vst.msk [vmem:[%s4156_s10 + $0x28] sm:$0xff] %vm2548_vm5, %v3070_v42  ;;  %3079 = vpow2.f32 %v2506_v56  ;;  %v2480_v49 = vsub.f32 0.0, %v2464_v29  ;;  %v2449_v26 = vadd.f32 %v4037_v43, %v2406_v9 }
 0x3a4   :  { %3081 = vrcp.f32 %v2524_v5 }
 0x3a5   :  { %v3072_v38 = vpop.eup %3071  ;;  %v2508_v50 = vmul.f32 1.442695, %v2480_v49  ;;  %v2465_v40 = vmul.f32 %v2449_v26, %v2433_v46 }
 0x3a6   :  { %v3074_v45 = vpop.eup %3073  ;;  %v2525_v52 = vadd.f32 1.0, %v3072_v38  ;;  %v2409_v22 = vpop.xlane.xlu1 %2408 }
 0x3a7   :  { %2555 = vst.msk [vmem:[%s4156_s10 + $0x30] sm:$0xff] %vm2548_vm5, %v3074_v45  ;;  %3083 = vpow2.f32 %v2508_v50  ;;  %v2481_v30 = vsub.f32 0.0, %v2465_v40  ;;  %v2450_v60 = vadd.f32 %v4037_v43, %v2409_v22 }
 0x3a8   :  { %3085 = vrcp.f32 %v2525_v52 }
 0x3a9   :  { %v3076_v61 = vpop.eup %3075  ;;  %v2510_v1 = vmul.f32 1.442695, %v2481_v30  ;;  %v2466_v39 = vmul.f32 %v2450_v60, %v2434_v53 }
 0x3aa   :  { %v3078_v15 = vpop.eup %3077  ;;  %v2526_v51 = vadd.f32 1.0, %v3076_v61  ;;  %v2412_v44 = vpop.xlane.xlu0 %2411 }
 0x3ab   :  { %2556 = vst.msk [vmem:[%s4156_s10 + $0x38] sm:$0xff] %vm2548_vm5, %v3078_v15  ;;  %3087 = vpow2.f32 %v2510_v1  ;;  %v2482_v10 = vsub.f32 0.0, %v2466_v39  ;;  %v2451_v47 = vadd.f32 %v4037_v43, %v2412_v44 }
 0x3ac   :  { %3089 = vrcp.f32 %v2526_v51 }
 0x3ad   :  { %v3080_v17 = vpop.eup %3079  ;;  %v2512_v0 = vmul.f32 1.442695, %v2482_v10  ;;  %v2467_v19 = vmul.f32 %v2451_v47, %v2435_v16 }
 0x3ae   :  { %v3082_v20 = vpop.eup %3081  ;;  %v2527_v12 = vadd.f32 1.0, %v3080_v17 }
 0x3af   :  { %2557 = vst.msk [vmem:[%s4156_s10 + $0x40] sm:$0xff] %vm2548_vm5, %v3082_v20  ;;  %3091 = vpow2.f32 %v2512_v0  ;;  %v2483_v11 = vsub.f32 0.0, %v2467_v19 }
 0x3b0   :  { %3093 = vrcp.f32 %v2527_v12 }
 0x3b1   :  { %v3084_v23 = vpop.eup %3083  ;;  %v2514_v36 = vmul.f32 1.442695, %v2483_v11 }
 0x3b2   :  { %v3086_v24 = vpop.eup %3085  ;;  %v2528_v34 = vadd.f32 1.0, %v3084_v23 }
 0x3b3   :  { %2558 = vst.msk [vmem:[%s4156_s10 + $0x48] sm:$0xff] %vm2548_vm5, %v3086_v24  ;;  %3095 = vpow2.f32 %v2514_v36 }
 0x3b4   :  { %3097 = vrcp.f32 %v2528_v34 }
 0x3b5   :  { %v3088_v43 = vpop.eup %3087 }
 0x3b6   :  { %v3090_v25 = vpop.eup %3089  ;;  %v2529_v27 = vadd.f32 1.0, %v3088_v43 }
 0x3b7   :  { %2559 = vst.msk [vmem:[%s4156_s10 + $0x50] sm:$0xff] %vm2548_vm5, %v3090_v25 }
 0x3b8   :  { %3099 = vrcp.f32 %v2529_v27 }
 0x3b9   :  { %v3092_v21 = vpop.eup %3091 }
 0x3ba   :  { %v3094_v4 = vpop.eup %3093  ;;  %v2530_v28 = vadd.f32 1.0, %v3092_v21 }
 0x3bb   :  { %2560 = vst.msk [vmem:[%s4156_s10 + $0x58] sm:$0xff] %vm2548_vm5, %v3094_v4 }
 0x3bc   :  { %3101 = vrcp.f32 %v2530_v28 }
 0x3bd   :  { %v3096_v48 = vpop.eup %3095 }
 0x3be   :  { %v3098_v2 = vpop.eup %3097  ;;  %v2531_v31 = vadd.f32 1.0, %v3096_v48 }
 0x3bf   :  { %2561 = vst.msk [vmem:[%s4156_s10 + $0x60] sm:$0xff] %vm2548_vm5, %v3098_v2 }
 0x3c0   :  { %3103 = vrcp.f32 %v2531_v31 }
 0x3c2   :  { %v3100_v62 = vpop.eup %3099 }
 0x3c3   :  { %2562 = vst.msk [vmem:[%s4156_s10 + $0x68] sm:$0xff] %vm2548_vm5, %v3100_v62 }
 0x3c6   :  { %v3102_v32 = vpop.eup %3101 }
 0x3c7   :  { %2563 = vst.msk [vmem:[%s4156_s10 + $0x70] sm:$0xff] %vm2548_vm5, %v3102_v32 }
 0x3ca   :  { %v3104_v54 = vpop.eup %3103 }
 0x3cb   :  { %2564 = vst.msk [vmem:[%s4156_s10 + $0x78] sm:$0xff] %vm2548_vm5, %v3104_v54 }

</bundles_post_ra>
